<compile_context>
chip_gen: v5e
topology: v5e:2x2
jax: 0.10.0
libtpu: 0.0.40
codegen_flags: <defaults>
</compile_context>

<pallas_src>
import functools

import numpy as np
import jax
import jax.numpy as jnp
from jax.experimental import pallas as pl
from jax.experimental.pallas import tpu as pltpu


# ----------------------------------------------------------------------------
# One-time parameter preparation (outside jit, outside the kernel)
# ----------------------------------------------------------------------------
def _window_selection_np(h, w, kh, kw, stride):
    """0/1 gather matrix per kernel tap: sel[k, q, p] == 1 iff input spatial
    index q feeds output spatial index p for tap k (VALID conv, given stride)."""
    oh = (h - kh) // stride + 1
    ow = (w - kw) // stride + 1
    sel = np.zeros((kh * kw, h * w, oh * ow), np.float32)
    for i in range(kh):
        for j in range(kw):
            k = i * kw + j
            for r in range(oh):
                for c in range(ow):
                    sel[k, (r * stride + i) * w + (c * stride + j), r * ow + c] = 1.0
    return sel, oh, ow


def prepare_conv_encode(params_weights, strides, h, w):
    """Fold every Conv2d into one dense A^T of shape (Cin*HWin, Cout*HWout)
    plus a flattened bias row, so each layer is a single matmul in the kernel.

        A^T[ci*HWin + q, co*HWout + p] = sum_k W[co, ci, tap k] * sel[k, q, p]
    """
    layers = []
    for (weight, bias), s in zip(params_weights, strides):
        wnp = np.asarray(weight, np.float32)          # (Cout, Cin, kh, kw)
        bnp = np.asarray(bias, np.float32)            # (Cout,)
        cout, cin, kh, kw = wnp.shape
        sel, oh, ow = _window_selection_np(h, w, kh, kw, s)
        w_taps = np.transpose(wnp, (2, 3, 0, 1)).reshape(kh * kw, cout, cin)
        at = np.einsum('koc,kqp->cqop', w_taps, sel).reshape(
            cin * h * w, cout * oh * ow)
        bias_flat = np.repeat(bnp, oh * ow).reshape(1, cout * oh * ow)
        layers.append((jnp.asarray(at, jnp.bfloat16),          # MXU-native
                       jnp.asarray(bias_flat, jnp.float32)))   # exact add
        h, w = oh, ow
    return layers, (h, w)


# ----------------------------------------------------------------------------
# Fused forward: one pallas_call for all layers, batch-parallel grid
# ----------------------------------------------------------------------------
def conv_encode_forward(x_nchw, layers, *, out_spatial):
    """Pallas implementation of Conv_Encode.forward.

    x_nchw : (B, C0, H, W) float32 (PyTorch NCHW input).
    layers : list of (A^T (Din, Dout) bf16, bias (1, Dout) f32) per conv layer.
    Returns (flatten (B, C_last*OH*OW), shape) like the PyTorch module.
    """
    B, C0, H, W = x_nchw.shape
    D0 = C0 * H * W
    d_last = layers[-1][0].shape[1]
    oh, ow = out_spatial
    c_last = d_last // (oh * ow)
    n_layers = len(layers)

    # Free row-major reshape of the NCHW layout; bf16 cast halves input DMA.
    x3 = x_nchw.reshape(B, 1, D0).astype(jnp.bfloat16)

    def kernel(x_ref, *refs):
        out_ref = refs[-1]
        layer_refs = refs[:-1]
        h = x_ref[0]                                     # (1, D0) bf16
        for l in range(n_layers):                        # static unroll (2 dots)
            at_ref, b_ref = layer_refs[2 * l], layer_refs[2 * l + 1]
            acc = jnp.dot(h, at_ref[...],                # one MXU matmul / layer
                          preferred_element_type=jnp.float32)
            acc = jnp.maximum(acc + b_ref[...], 0.0)     # bias + ReLU in f32
            h = acc.astype(jnp.bfloat16) if l + 1 < n_layers else acc
        out_ref[0] = h.astype(out_ref.dtype)             # lane-dense (1, d_last)

    flat_inputs = [x3]
    in_specs = [pl.BlockSpec((1, 1, D0), lambda b: (b, 0, 0))]
    for at, bias_flat in layers:
        flat_inputs += [at, bias_flat]
        in_specs += [pl.BlockSpec(at.shape, lambda b: (0, 0)),       # resident
                     pl.BlockSpec(bias_flat.shape, lambda b: (0, 0))]

    out3 = pl.pallas_call(
        kernel,
        out_shape=jax.ShapeDtypeStruct((B, 1, d_last), jnp.float32),
        grid=(B,),
        in_specs=in_specs,
        out_specs=pl.BlockSpec((1, 1, d_last), lambda b: (b, 0, 0)),
        compiler_params=pltpu.CompilerParams(
            dimension_semantics=("parallel",)),          # both TCs on v7x
    )(*flat_inputs)

    flatten = out3.reshape(B, d_last)                    # free: NCHW-ordered
    return flatten, (B, c_last, oh, ow)


# ----------------------------------------------------------------------------
# Deterministic parameter init (mirrors nn.Conv2d shapes) + plain-JAX reference
# ----------------------------------------------------------------------------
def init_params(key, channels, kernels):
    params = []
    for i in range(len(channels) - 1):
        cin, cout, k = channels[i], channels[i + 1], kernels[i]
        key, kw_key, kb_key = jax.random.split(key, 3)
        fan_in = cin * k * k
        bound = 1.0 / (fan_in ** 0.5)
        w = jax.random.uniform(kw_key, (cout, cin, k, k), jnp.float32,
                               minval=-bound, maxval=bound)
        b = jax.random.uniform(kb_key, (cout,), jnp.float32,
                               minval=-bound, maxval=bound)
        params.append((w, b))
    return params


def _reference_forward(x_nchw, params_weights, strides):
    """Plain-JAX reference (conv + relu stack, NCHW flatten)."""
    out = x_nchw
    for (weight, bias), s in zip(params_weights, strides):
        out = jax.lax.conv_general_dilated(
            out, weight, window_strides=(s, s), padding="VALID",
            dimension_numbers=("NCHW", "OIHW", "NCHW"),
            precision=jax.lax.Precision.HIGHEST)
        out = jnp.maximum(out + bias.reshape(1, -1, 1, 1), 0.0)
    return out.reshape(out.shape[0], -1), out.shape


if __name__ == "__main__":
    # Conv_Encode config: channels=[4, 8, 16], kernels=[3, 3], strides=[2, 2]
    channels = [4, 8, 16]
    kernels = [3, 3]
    strides = [2, 2]

    key = jax.random.PRNGKey(0)
    key, xkey = jax.random.split(key)
    x = jax.random.normal(xkey, (2, 4, 16, 16), jnp.float32)   # NCHW input

    params = init_params(key, channels, kernels)
    layers, out_hw = prepare_conv_encode(params, strides, 16, 16)

    fwd = jax.jit(functools.partial(conv_encode_forward, out_spatial=out_hw))
    flatten, out_shape = fwd(x, layers)
    flatten = jax.block_until_ready(flatten)

    # Shape checks: 16x16 -k3s2-> 7x7 -k3s2-> 3x3, Cout=16.
    assert tuple(int(d) for d in out_shape) == (2, 16, 3, 3), out_shape
    assert flatten.shape == (2, 16 * 3 * 3), flatten.shape
    assert bool(jnp.all(flatten >= 0.0))        # ReLU output is non-negative

    # Numerical check vs f32 reference (bf16 operands, f32 accumulation).
    ref_flat, ref_shape = _reference_forward(x, params, strides)
    assert ref_shape == (2, 16, 3, 3), ref_shape
    assert bool(jnp.allclose(flatten, ref_flat, atol=3e-2, rtol=3e-2)), (
        float(jnp.max(jnp.abs(flatten - ref_flat))))

    print("KERNEL_OK")
</pallas_src>

<mosaic_0001>
module attributes {stable_mosaic.version = 11 : i64} {
  func.func @kernel(%arg0: i32, %arg1: memref<1x1x1024xbf16, #tpu.memory_space<vmem>>, %arg2: memref<1024x392xbf16, #tpu.memory_space<vmem>>, %arg3: memref<1x392xf32, #tpu.memory_space<vmem>>, %arg4: memref<392x144xbf16, #tpu.memory_space<vmem>>, %arg5: memref<1x144xf32, #tpu.memory_space<vmem>>, %arg6: memref<1x1x144xf32, #tpu.memory_space<vmem>>) attributes {dimension_semantics = [#tpu.dimension_semantics<parallel>], iteration_bounds = array<i64: 2>, scalar_prefetch = 0 : i64, scratch_operands = 0 : i64, tpu.core_type = #tpu.core_type<tc>, window_params = [{transform_indices = @transform_0, window_bounds = array<i64: 1, 1, 1024>}, {pipeline_mode = #tpu.pipeline_mode<synchronous>, transform_indices = @transform_1, window_bounds = array<i64: 1024, 392>}, {pipeline_mode = #tpu.pipeline_mode<synchronous>, transform_indices = @transform_2, window_bounds = array<i64: 1, 392>}, {pipeline_mode = #tpu.pipeline_mode<synchronous>, transform_indices = @transform_3, window_bounds = array<i64: 392, 144>}, {pipeline_mode = #tpu.pipeline_mode<synchronous>, transform_indices = @transform_4, window_bounds = array<i64: 1, 144>}, {transform_indices = @transform_5, window_bounds = array<i64: 1, 1, 144>}]} {
    %c0 = arith.constant 0 : index
    %c0_0 = arith.constant 0 : index
    %c0_1 = arith.constant 0 : index
    %0 = vector.load %arg1[%c0, %c0_0, %c0_1] : memref<1x1x1024xbf16, #tpu.memory_space<vmem>>, vector<1x1x1024xbf16>
    %1 = vector.shape_cast %0 : vector<1x1x1024xbf16> to vector<1x1024xbf16>
    %c0_2 = arith.constant 0 : index
    %c0_3 = arith.constant 0 : index
    %2 = vector.load %arg2[%c0_2, %c0_3] : memref<1024x392xbf16, #tpu.memory_space<vmem>>, vector<1024x392xbf16>
    %cst = arith.constant dense<0.000000e+00> : vector<1x392xf32>
    %3 = tpu.matmul %1, %2, %cst {dimension_numbers = #tpu.dot_dimension_numbers<[1], [0], [0], [1], [0, 0, 1, 1], [], []>} : vector<1x1024xbf16>, vector<1024x392xbf16>, vector<1x392xf32> -> vector<1x392xf32>
    %c0_4 = arith.constant 0 : index
    %c0_5 = arith.constant 0 : index
    %4 = vector.load %arg3[%c0_4, %c0_5] : memref<1x392xf32, #tpu.memory_space<vmem>>, vector<1x392xf32>
    %5 = arith.addf %3, %4 : vector<1x392xf32>
    %cst_6 = arith.constant 0.000000e+00 : f32
    %6 = vector.broadcast %cst_6 : f32 to vector<1x392xf32>
    %7 = arith.maximumf %5, %6 : vector<1x392xf32>
    %8 = arith.truncf %7 : vector<1x392xf32> to vector<1x392xbf16>
    %c0_7 = arith.constant 0 : index
    %c0_8 = arith.constant 0 : index
    %9 = vector.load %arg4[%c0_7, %c0_8] : memref<392x144xbf16, #tpu.memory_space<vmem>>, vector<392x144xbf16>
    %cst_9 = arith.constant dense<0.000000e+00> : vector<1x144xf32>
    %10 = tpu.matmul %8, %9, %cst_9 {dimension_numbers = #tpu.dot_dimension_numbers<[1], [0], [0], [1], [0, 0, 1, 1], [], []>} : vector<1x392xbf16>, vector<392x144xbf16>, vector<1x144xf32> -> vector<1x144xf32>
    %c0_10 = arith.constant 0 : index
    %c0_11 = arith.constant 0 : index
    %11 = vector.load %arg5[%c0_10, %c0_11] : memref<1x144xf32, #tpu.memory_space<vmem>>, vector<1x144xf32>
    %12 = arith.addf %10, %11 : vector<1x144xf32>
    %cst_12 = arith.constant 0.000000e+00 : f32
    %13 = vector.broadcast %cst_12 : f32 to vector<1x144xf32>
    %14 = arith.maximumf %12, %13 : vector<1x144xf32>
    %c0_13 = arith.constant 0 : index
    %c0_14 = arith.constant 0 : index
    %c0_15 = arith.constant 0 : index
    %15 = vector.load %arg6[%c0_13, %c0_14, %c0_15] : memref<1x1x144xf32, #tpu.memory_space<vmem>>, vector<1x1x144xf32>
    %16 = vector.shape_cast %15 : vector<1x1x144xf32> to vector<1x144xf32>
    %17 = vector.shape_cast %14 : vector<1x144xf32> to vector<1x1x144xf32>
    tpu.vector_store %arg6[%c0_13, %c0_14, %c0_15], %17 {strides = array<i32>} : memref<1x1x144xf32, #tpu.memory_space<vmem>>, vector<1x1x144xf32>,
    return
  }
  func.func @transform_0(%arg0: i32) -> (i32, i32, i32) {
    %c0_i32 = arith.constant 0 : i32
    %c0_i32_0 = arith.constant 0 : i32
    %c0_i32_1 = arith.constant 0 : i32
    return %arg0, %c0_i32, %c0_i32_0 : i32, i32, i32
  }
  func.func @transform_1(%arg0: i32) -> (i32, i32) {
    %c0_i32 = arith.constant 0 : i32
    %c0_i32_0 = arith.constant 0 : i32
    %c0_i32_1 = arith.constant 0 : i32
    return %c0_i32, %c0_i32_0 : i32, i32
  }
  func.func @transform_2(%arg0: i32) -> (i32, i32) {
    %c0_i32 = arith.constant 0 : i32
    %c0_i32_0 = arith.constant 0 : i32
    %c0_i32_1 = arith.constant 0 : i32
    return %c0_i32, %c0_i32_0 : i32, i32
  }
  func.func @transform_3(%arg0: i32) -> (i32, i32) {
    %c0_i32 = arith.constant 0 : i32
    %c0_i32_0 = arith.constant 0 : i32
    %c0_i32_1 = arith.constant 0 : i32
    return %c0_i32, %c0_i32_0 : i32, i32
  }
  func.func @transform_4(%arg0: i32) -> (i32, i32) {
    %c0_i32 = arith.constant 0 : i32
    %c0_i32_0 = arith.constant 0 : i32
    %c0_i32_1 = arith.constant 0 : i32
    return %c0_i32, %c0_i32_0 : i32, i32
  }
  func.func @transform_5(%arg0: i32) -> (i32, i32, i32) {
    %c0_i32 = arith.constant 0 : i32
    %c0_i32_0 = arith.constant 0 : i32
    %c0_i32_1 = arith.constant 0 : i32
    return %arg0, %c0_i32, %c0_i32_0 : i32, i32, i32
  }
}

</mosaic_0001>

<bundles_post_ra>
// kernel: conv_encode_forward.1
= control target key start
LH: loop header
LB: loop body
LE: loop exit
PB: predicated region body
PF: predicated region fallthrough
CT: control target
= control target key end

     0   :  { %s4277_s18 = smov 0   ;;  %s6220_s0 = inlined_call_operand.vmem [shape: bf16[2,1,1024], index: 0, kind: input, shape index: {}]   ;;  %s6221_s1 = inlined_call_operand.vmem [shape: bf16[1024,392], index: 1, kind: input, shape index: {}]   ;;  %s6222_s2 = inlined_call_operand.vmem [shape: f32[1,392], index: 2, kind: input, shape index: {}]   ;;  %s6223_s3 = inlined_call_operand.vmem [shape: bf16[392,144], index: 3, kind: input, shape index: {}]   ;;  %s6224_s4 = inlined_call_operand.vmem [shape: f32[1,144], index: 4, kind: input, shape index: {}]   ;;  %s6225_s5 = inlined_call_operand.vmem [shape: f32[2,1,144], index: 5, kind: output, shape index: {}]  }
   0x1 LB: > { %s2691_s19 = sadd.s32 4294967295, %s4245_s18   ;;  %p2695_p0 = scmp.ge.s32.totalorder %s4245_s18, 1  ;;  %s4245_s18 = sphi %s4277_s18, %s15_s18  }
   0x2   : > { %p186_p1 = scmp.lt.s32.totalorder %s4245_s18, 3 }
   0x4   : > { %p187_p2 = pnand %p2695_p0, %p186_p1 }
   0x5   : > { %p212_p3 = scmp.lt.s32.totalorder (!%p187_p2), %s2691_s19, 1 }
   0x6   : > { %190 = sbr.rel (%p187_p2) target bundleno = 577 (0x241), region = 40 }
   0xb   : > { %v2812_v0 = vld [vmem:[%s6221_s1 + $0xe0] sm:$0xf]  ;;  %v3948_v1 = vld [vmem:[%s6221_s1 + $0xec] sm:$0xf0]  ;;  %s6227_s19 = smov (!%p212_p3, %s2691_s19), 1  ;;  %vm2514_vm0 = vcmask 1043456  }
   0xc   : > { %v2940_v2 = vld [vmem:[%s6221_s1 + $0x1e0] sm:$0xf]  ;;  %v2813_v3 = vor.u32 %v3948_v1, %v2812_v0  ;;  %v3980_v4 = vld [vmem:[%s6221_s1 + $0x1ec] sm:$0xf0]  ;;  %s2696_s30 = sshll.u32 %s6227_s19, 3  ;;  %vm2510_vm1 = vcmask 64512  }
   0xd   : > { %v3068_v5 = vld [vmem:[%s6221_s1 + $0x2e0] sm:$0xf]  ;;  %v4012_v6 = vld [vmem:[%s6221_s1 + $0x2ec] sm:$0xf0]  ;;  %v2941_v7 = vor.u32 %v3980_v4, %v2940_v2  ;;  %s215_s14 = scalar_lea.vmem %s6220_s0, %s2696_s30  ;;  %s2697_s29 = sshll.u32 %s6227_s19, 1  ;;  %vm2630_vm2 = vcmask 1040384  }
   0xe   : > { %v3069_v8 = vor.u32 %v4012_v6, %v3068_v5  ;;  %v3196_v9 = vld [vmem:[%s6221_s1 + $0x3e0] sm:$0xf]  ;;  %v4044_v10 = vld [vmem:[%s6221_s1 + $0x3ec] sm:$0xf0]  ;;  %1786 = vmatpush.bf16.msra.mxu0 %v2813_v3  ;;  %s219_s7 = scalar_lea.vmem %s6225_s5, %s2697_s29 }
   0xf   : > { %v2796_v11 = vld [vmem:[%s6221_s1 + $0xc0] sm:$0xf]  ;;  %v3197_v12 = vor.u32 %v4044_v10, %v3196_v9  ;;  %v3944_v13 = vld [vmem:[%s6221_s1 + $0xcc] sm:$0xf0]  ;;  %1799 = vmatpush.bf16.msra.mxu1 %v2941_v7 }
  0x10   : > { %v2924_v14 = vld [vmem:[%s6221_s1 + $0x1c0] sm:$0xf]  ;;  %v3976_v15 = vld [vmem:[%s6221_s1 + $0x1cc] sm:$0xf0]  ;;  %1812 = vmatpush.bf16.msra.mxu2 %v3069_v8  ;;  %v2797_v16 = vor.u32 %v3944_v13, %v2796_v11 }
  0x11   : > { %v2925_v17 = vor.u32 %v3976_v15, %v2924_v14  ;;  %v3052_v18 = vld [vmem:[%s6221_s1 + $0x2c0] sm:$0xf]  ;;  %v4008_v19 = vld [vmem:[%s6221_s1 + $0x2cc] sm:$0xf0]  ;;  %1825 = vmatpush.bf16.msra.mxu3 %v3197_v12 }
  0x12   : > { %v3180_v20 = vld [vmem:[%s6221_s1 + $0x3c0] sm:$0xf]  ;;  %v3053_v21 = vor.u32 %v4008_v19, %v3052_v18  ;;  %v4040_v22 = vld [vmem:[%s6221_s1 + $0x3cc] sm:$0xf0]  ;;  %1787 = vmatpush.bf16.msra.mxu0 %v2797_v16 }
  0x13   : > { %v2780_v23 = vld [vmem:[%s6221_s1 + $0xa0] sm:$0xf]  ;;  %v3940_v24 = vld [vmem:[%s6221_s1 + $0xac] sm:$0xf0]  ;;  %v3181_v25 = vor.u32 %v4040_v22, %v3180_v20  ;;  %1800 = vmatpush.bf16.msra.mxu1 %v2925_v17 }
  0x14   : > { %v2908_v26 = vld [vmem:[%s6221_s1 + $0x1a0] sm:$0xf]  ;;  %v3972_v27 = vld [vmem:[%s6221_s1 + $0x1ac] sm:$0xf0]  ;;  %v2781_v29 = vor.u32 %v3940_v24, %v2780_v23  ;;  %1813 = vmatpush.bf16.msra.mxu2 %v3053_v21 }
  0x15   : > { %v3036_v28 = vld [vmem:[%s6221_s1 + $0x2a0] sm:$0xf]  ;;  %v4004_v30 = vld [vmem:[%s6221_s1 + $0x2ac] sm:$0xf0]  ;;  %v2909_v33 = vor.u32 %v3972_v27, %v2908_v26  ;;  %1826 = vmatpush.bf16.msra.mxu3 %v3181_v25 }
  0x16   : > { %v3164_v31 = vld [vmem:[%s6221_s1 + $0x3a0] sm:$0xf]  ;;  %v4036_v32 = vld [vmem:[%s6221_s1 + $0x3ac] sm:$0xf0]  ;;  %v3037_v34 = vor.u32 %v4004_v30, %v3036_v28  ;;  %1788 = vmatpush.bf16.msra.mxu0 %v2781_v29 }
  0x17   : > { %v2764_v35 = vld [vmem:[%s6221_s1 + $0x80] sm:$0xf]  ;;  %v3936_v36 = vld [vmem:[%s6221_s1 + $0x8c] sm:$0xf0]  ;;  %v3165_v38 = vor.u32 %v4036_v32, %v3164_v31  ;;  %1801 = vmatpush.bf16.msra.mxu1 %v2909_v33 }
  0x18   : > { %v2892_v37 = vld [vmem:[%s6221_s1 + $0x180] sm:$0xf]  ;;  %v3968_v39 = vld [vmem:[%s6221_s1 + $0x18c] sm:$0xf0]  ;;  %v2765_v44 = vor.u32 %v3936_v36, %v2764_v35  ;;  %1814 = vmatpush.bf16.msra.mxu2 %v3037_v34 }
  0x19   : > { %v3020_v40 = vld [vmem:[%s6221_s1 + $0x280] sm:$0xf]  ;;  %v4000_v41 = vld [vmem:[%s6221_s1 + $0x28c] sm:$0xf0]  ;;  %v2893_v45 = vor.u32 %v3968_v39, %v2892_v37  ;;  %1827 = vmatpush.bf16.msra.mxu3 %v3165_v38 }
  0x1a   : > { %v3148_v42 = vld [vmem:[%s6221_s1 + $0x380] sm:$0xf]  ;;  %v4032_v43 = vld [vmem:[%s6221_s1 + $0x38c] sm:$0xf0]  ;;  %v3021_v46 = vor.u32 %v4000_v41, %v3020_v40  ;;  %1789 = vmatpush.bf16.msra.mxu0 %v2765_v44 }
  0x1b   : > { %v2748_v47 = vld [vmem:[%s6221_s1 + $0x60] sm:$0xf]  ;;  %v3932_v48 = vld [vmem:[%s6221_s1 + $0x6c] sm:$0xf0]  ;;  %v3149_v50 = vor.u32 %v4032_v43, %v3148_v42  ;;  %1802 = vmatpush.bf16.msra.mxu1 %v2893_v45 }
  0x1c   : > { %v2876_v49 = vld [vmem:[%s6221_s1 + $0x160] sm:$0xf]  ;;  %v3964_v51 = vld [vmem:[%s6221_s1 + $0x16c] sm:$0xf0]  ;;  %v2749_v56 = vor.u32 %v3932_v48, %v2748_v47  ;;  %1815 = vmatpush.bf16.msra.mxu2 %v3021_v46 }
  0x1d   : > { %v3004_v52 = vld [vmem:[%s6221_s1 + $0x260] sm:$0xf]  ;;  %v3996_v53 = vld [vmem:[%s6221_s1 + $0x26c] sm:$0xf0]  ;;  %v2877_v57 = vor.u32 %v3964_v51, %v2876_v49  ;;  %1828 = vmatpush.bf16.msra.mxu3 %v3149_v50 }
  0x1e   : > { %v3132_v54 = vld [vmem:[%s6221_s1 + $0x360] sm:$0xf]  ;;  %v4028_v55 = vld [vmem:[%s6221_s1 + $0x36c] sm:$0xf0]  ;;  %v3005_v58 = vor.u32 %v3996_v53, %v3004_v52  ;;  %1790 = vmatpush.bf16.msra.mxu0 %v2749_v56 }
  0x1f   : > { %v2732_v59 = vld [vmem:[%s6221_s1 + $0x40] sm:$0xf]  ;;  %v3928_v60 = vld [vmem:[%s6221_s1 + $0x4c] sm:$0xf0]  ;;  %v3133_v62 = vor.u32 %v4028_v55, %v3132_v54  ;;  %1803 = vmatpush.bf16.msra.mxu1 %v2877_v57 }
  0x20   : > { %v2860_v61 = vld [vmem:[%s6221_s1 + $0x140] sm:$0xf]  ;;  %v3960_v63 = vld [vmem:[%s6221_s1 + $0x14c] sm:$0xf0]  ;;  %v2733_v4 = vor.u32 %v3928_v60, %v2732_v59  ;;  %1816 = vmatpush.bf16.msra.mxu2 %v3005_v58 }
  0x21   : > { %v2988_v0 = vld [vmem:[%s6221_s1 + $0x240] sm:$0xf]  ;;  %v3992_v1 = vld [vmem:[%s6221_s1 + $0x24c] sm:$0xf0]  ;;  %v2861_v5 = vor.u32 %v3960_v63, %v2860_v61  ;;  %1829 = vmatpush.bf16.msra.mxu3 %v3133_v62 }
  0x22   : > { %v3116_v2 = vld [vmem:[%s6221_s1 + $0x340] sm:$0xf]  ;;  %v4024_v3 = vld [vmem:[%s6221_s1 + $0x34c] sm:$0xf0]  ;;  %v2989_v6 = vor.u32 %v3992_v1, %v2988_v0  ;;  %1791 = vmatpush.bf16.msra.mxu0 %v2733_v4 }
  0x23   : > { %v2716_v7 = vld [vmem:[%s6221_s1 + $0x20] sm:$0xf]  ;;  %v3924_v8 = vld [vmem:[%s6221_s1 + $0x2c] sm:$0xf0]  ;;  %v3117_v10 = vor.u32 %v4024_v3, %v3116_v2  ;;  %1804 = vmatpush.bf16.msra.mxu1 %v2861_v5 }
  0x24   : > { %v2844_v9 = vld [vmem:[%s6221_s1 + $0x120] sm:$0xf]  ;;  %v3956_v11 = vld [vmem:[%s6221_s1 + $0x12c] sm:$0xf0]  ;;  %v2717_v16 = vor.u32 %v3924_v8, %v2716_v7  ;;  %1817 = vmatpush.bf16.msra.mxu2 %v2989_v6 }
  0x25   : > { %v2972_v12 = vld [vmem:[%s6221_s1 + $0x220] sm:$0xf]  ;;  %v3988_v13 = vld [vmem:[%s6221_s1 + $0x22c] sm:$0xf0]  ;;  %v2845_v19 = vor.u32 %v3956_v11, %v2844_v9  ;;  %1830 = vmatpush.bf16.msra.mxu3 %v3117_v10 }
  0x26   : > { %v3100_v14 = vld [vmem:[%s6221_s1 + $0x320] sm:$0xf]  ;;  %v4020_v15 = vld [vmem:[%s6221_s1 + $0x32c] sm:$0xf0]  ;;  %v2973_v20 = vor.u32 %v3988_v13, %v2972_v12  ;;  %1792 = vmatpush.bf16.msra.mxu0 %v2717_v16 }
  0x27   : > { %v2700_v17 = vld [vmem:[%s6221_s1] sm:$0xf]  ;;  %v3920_v18 = vld [vmem:[%s6221_s1 + $0xc] sm:$0xf0]  ;;  %v3101_v24 = vor.u32 %v4020_v15, %v3100_v14  ;;  %1805 = vmatpush.bf16.msra.mxu1 %v2845_v19 }
  0x28   : > { %v2828_v21 = vld [vmem:[%s6221_s1 + $0x100] sm:$0xf]  ;;  %v3952_v22 = vld [vmem:[%s6221_s1 + $0x10c] sm:$0xf0]  ;;  %v2701_v31 = vor.u32 %v3920_v18, %v2700_v17  ;;  %1818 = vmatpush.bf16.msra.mxu2 %v2973_v20 }
  0x29   : > { %v2956_v23 = vld [vmem:[%s6221_s1 + $0x200] sm:$0xf]  ;;  %v3984_v25 = vld [vmem:[%s6221_s1 + $0x20c] sm:$0xf0]  ;;  %v2829_v35 = vor.u32 %v3952_v22, %v2828_v21  ;;  %1831 = vmatpush.bf16.msra.mxu3 %v3101_v24 }
  0x2a   : > { %v3084_v26 = vld [vmem:[%s6221_s1 + $0x300] sm:$0xf]  ;;  %v4016_v27 = vld [vmem:[%s6221_s1 + $0x30c] sm:$0xf0]  ;;  %v2957_v36 = vor.u32 %v3984_v25, %v2956_v23  ;;  %1793 = vmatpush.bf16.msra.mxu0 %v2701_v31 }
  0x2b   : > { %v3324_v28 = vld [vmem:[%s6221_s1 + $0x4e0] sm:$0xf]  ;;  %v4076_v29 = vld [vmem:[%s6221_s1 + $0x4ec] sm:$0xf0]  ;;  %v3085_v39 = vor.u32 %v4016_v27, %v3084_v26  ;;  %1806 = vmatpush.bf16.msra.mxu1 %v2829_v35 }
  0x2c   : > { %v3452_v30 = vld [vmem:[%s6221_s1 + $0x5e0] sm:$0xf]  ;;  %v4108_v32 = vld [vmem:[%s6221_s1 + $0x5ec] sm:$0xf0]  ;;  %v3325_v40 = vor.u32 %v4076_v29, %v3324_v28  ;;  %1819 = vmatpush.bf16.msra.mxu2 %v2957_v36 }
  0x2d   : > { %v3580_v33 = vld [vmem:[%s6221_s1 + $0x6e0] sm:$0xf]  ;;  %v4140_v34 = vld [vmem:[%s6221_s1 + $0x6ec] sm:$0xf0]  ;;  %v3453_v41 = vor.u32 %v4108_v32, %v3452_v30  ;;  %1832 = vmatpush.bf16.msra.mxu3 %v3085_v39 }
  0x2e   : > { %v3708_v37 = vld [vmem:[%s6221_s1 + $0x7e0] sm:$0xf]  ;;  %v4172_v38 = vld [vmem:[%s6221_s1 + $0x7ec] sm:$0xf0]  ;;  %v3581_v42 = vor.u32 %v4140_v34, %v3580_v33  ;;  %1838 = vmatpush.bf16.msrb.mxu0 %v3325_v40 }
  0x2f   : > { %v3308_v43 = vld [vmem:[%s6221_s1 + $0x4c0] sm:$0xf]  ;;  %v4072_v44 = vld [vmem:[%s6221_s1 + $0x4cc] sm:$0xf0]  ;;  %v3709_v46 = vor.u32 %v4172_v38, %v3708_v37  ;;  %1851 = vmatpush.bf16.msrb.mxu1 %v3453_v41 }
  0x30   : > { %v3436_v45 = vld [vmem:[%s6221_s1 + $0x5c0] sm:$0xf]  ;;  %v4104_v47 = vld [vmem:[%s6221_s1 + $0x5cc] sm:$0xf0]  ;;  %v3309_v52 = vor.u32 %v4072_v44, %v3308_v43  ;;  %1864 = vmatpush.bf16.msrb.mxu2 %v3581_v42 }
  0x31   : > { %v3564_v48 = vld [vmem:[%s6221_s1 + $0x6c0] sm:$0xf]  ;;  %v4136_v49 = vld [vmem:[%s6221_s1 + $0x6cc] sm:$0xf0]  ;;  %v3437_v53 = vor.u32 %v4104_v47, %v3436_v45  ;;  %1877 = vmatpush.bf16.msrb.mxu3 %v3709_v46 }
  0x32   : > { %v3692_v50 = vld [vmem:[%s6221_s1 + $0x7c0] sm:$0xf]  ;;  %v4168_v51 = vld [vmem:[%s6221_s1 + $0x7cc] sm:$0xf0]  ;;  %v3565_v54 = vor.u32 %v4136_v49, %v3564_v48  ;;  %1839 = vmatpush.bf16.msrb.mxu0 %v3309_v52 }
  0x33   : > { %v3292_v55 = vld [vmem:[%s6221_s1 + $0x4a0] sm:$0xf]  ;;  %v4068_v56 = vld [vmem:[%s6221_s1 + $0x4ac] sm:$0xf0]  ;;  %v3693_v58 = vor.u32 %v4168_v51, %v3692_v50  ;;  %1852 = vmatpush.bf16.msrb.mxu1 %v3437_v53 }
  0x34   : > { %v3420_v57 = vld [vmem:[%s6221_s1 + $0x5a0] sm:$0xf]  ;;  %v4100_v59 = vld [vmem:[%s6221_s1 + $0x5ac] sm:$0xf0]  ;;  %v3293_v0 = vor.u32 %v4068_v56, %v3292_v55  ;;  %1865 = vmatpush.bf16.msrb.mxu2 %v3565_v54 }
  0x35   : > { %v3548_v60 = vld [vmem:[%s6221_s1 + $0x6a0] sm:$0xf]  ;;  %v4132_v61 = vld [vmem:[%s6221_s1 + $0x6ac] sm:$0xf0]  ;;  %v3421_v2 = vor.u32 %v4100_v59, %v3420_v57  ;;  %1878 = vmatpush.bf16.msrb.mxu3 %v3693_v58 }
  0x36   : > { %v3676_v62 = vld [vmem:[%s6221_s1 + $0x7a0] sm:$0xf]  ;;  %v4164_v63 = vld [vmem:[%s6221_s1 + $0x7ac] sm:$0xf0]  ;;  %v3549_v3 = vor.u32 %v4132_v61, %v3548_v60  ;;  %1840 = vmatpush.bf16.msrb.mxu0 %v3293_v0 }
  0x37   : > { %v3276_v1 = vld [vmem:[%s6221_s1 + $0x480] sm:$0xf]  ;;  %v4064_v4 = vld [vmem:[%s6221_s1 + $0x48c] sm:$0xf0]  ;;  %v3677_v7 = vor.u32 %v4164_v63, %v3676_v62  ;;  %1853 = vmatpush.bf16.msrb.mxu1 %v3421_v2  ;;  %v2814_v2 = vld [vmem:[%s6221_s1 + $0xf0] sm:$0xf0] }
  0x38   : > { %v3404_v5 = vld [vmem:[%s6221_s1 + $0x580] sm:$0xf]  ;;  %v4096_v6 = vld [vmem:[%s6221_s1 + $0x58c] sm:$0xf0]  ;;  %v3277_v12 = vor.u32 %v4064_v4, %v3276_v1  ;;  %1866 = vmatpush.bf16.msrb.mxu2 %v3549_v3  ;;  %v3946_v1 = vld [vmem:[%s6221_s1 + $0xe4] sm:$0xf] }
  0x39   : > { %v3532_v8 = vld [vmem:[%s6221_s1 + $0x680] sm:$0xf]  ;;  %v4128_v9 = vld [vmem:[%s6221_s1 + $0x68c] sm:$0xf0]  ;;  %v3405_v14 = vor.u32 %v4096_v6, %v3404_v5  ;;  %1879 = vmatpush.bf16.msrb.mxu3 %v3677_v7  ;;  %v3978_v3 = vld [vmem:[%s6221_s1 + $0x1e4] sm:$0xf] }
  0x3a   : > { %v3660_v10 = vld [vmem:[%s6221_s1 + $0x780] sm:$0xf]  ;;  %v4160_v11 = vld [vmem:[%s6221_s1 + $0x78c] sm:$0xf0]  ;;  %v3533_v15 = vor.u32 %v4128_v9, %v3532_v8  ;;  %1841 = vmatpush.bf16.msrb.mxu0 %v3277_v12  ;;  %v2942_v5 = vld [vmem:[%s6221_s1 + $0x1f0] sm:$0xf0] }
  0x3b   : > { %v3260_v13 = vld [vmem:[%s6221_s1 + $0x460] sm:$0xf]  ;;  %v4060_v16 = vld [vmem:[%s6221_s1 + $0x46c] sm:$0xf0]  ;;  %v3661_v19 = vor.u32 %v4160_v11, %v3660_v10  ;;  %1854 = vmatpush.bf16.msrb.mxu1 %v3405_v14  ;;  %v4010_v6 = vld [vmem:[%s6221_s1 + $0x2e4] sm:$0xf]  ;;  %v2945_v14 = vor.u32 %v3978_v3, %v2942_v5 }
  0x3c   : > { %v3388_v17 = vld [vmem:[%s6221_s1 + $0x560] sm:$0xf]  ;;  %v4092_v18 = vld [vmem:[%s6221_s1 + $0x56c] sm:$0xf0]  ;;  %v3261_v25 = vor.u32 %v4060_v16, %v3260_v13  ;;  %1867 = vmatpush.bf16.msrb.mxu2 %v3533_v15  ;;  %v3070_v7 = vld [vmem:[%s6221_s1 + $0x2f0] sm:$0xf0]  ;;  %v2817_v13 = vor.u32 %v3946_v1, %v2814_v2 }
  0x3d   : > { %v3516_v20 = vld [vmem:[%s6221_s1 + $0x660] sm:$0xf]  ;;  %v4124_v21 = vld [vmem:[%s6221_s1 + $0x66c] sm:$0xf0]  ;;  %v3389_v26 = vor.u32 %v4092_v18, %v3388_v17  ;;  %1880 = vmatpush.bf16.msrb.mxu3 %v3661_v19  ;;  %v4042_v10 = vld [vmem:[%s6221_s1 + $0x3e4] sm:$0xf]  ;;  %v3073_v15 = vor.u32 %v4010_v6, %v3070_v7 }
  0x3e   : > { %v221_v22 = vld [vmem:[%s215_s14] sm:$0xff]  ;;  %v4156_v24 = vld [vmem:[%s6221_s1 + $0x76c] sm:$0xf0]  ;;  %v3517_v27 = vor.u32 %v4124_v21, %v3516_v20  ;;  %1842 = vmatpush.bf16.msrb.mxu0 %v3261_v25  ;;  %v3198_v11 = vld [vmem:[%s6221_s1 + $0x3f0] sm:$0xf0] }
  0x3f   : > { %v3644_v23 = vld [vmem:[%s6221_s1 + $0x760] sm:$0xf]  ;;  %480 = vst [vmem:[#allocation1] ss:$9 sm:$0xff] %v221_v22  ;;  %v4056_v29 = vld [vmem:[%s6221_s1 + $0x44c] sm:$0xf0]  ;;  %1855 = vmatpush.bf16.msrb.mxu1 %v3389_v26  ;;  %v3201_v19 = vor.u32 %v4042_v10, %v3198_v11 }
  0x40   : > { %v3244_v28 = vld [vmem:[%s6221_s1 + $0x440] sm:$0xf]  ;;  %v3645_v31 = vor.u32 %v4156_v24, %v3644_v23  ;;  %v4088_v32 = vld [vmem:[%s6221_s1 + $0x54c] sm:$0xf0]  ;;  %1868 = vmatpush.bf16.msrb.mxu2 %v3517_v27  ;;  %v3942_v16 = vld [vmem:[%s6221_s1 + $0xc4] sm:$0xf] }
  0x41   : > { %v3372_v30 = vld [vmem:[%s6221_s1 + $0x540] sm:$0xf]  ;;  %v4120_v34 = vld [vmem:[%s6221_s1 + $0x64c] sm:$0xf0]  ;;  %v3245_v37 = vor.u32 %v4056_v29, %v3244_v28  ;;  %v2798_v17 = vld [vmem:[%s6221_s1 + $0xd0] sm:$0xf0] }
  0x42   : > { %v3500_v33 = vld [vmem:[%s6221_s1 + $0x640] sm:$0xf]  ;;  %v4152_v36 = vld [vmem:[%s6221_s1 + $0x74c] sm:$0xf0]  ;;  %v3373_v41 = vor.u32 %v4088_v32, %v3372_v30  ;;  %1881 = vmatpush.bf16.msrb.mxu3 %v3645_v31  ;;  %v3974_v18 = vld [vmem:[%s6221_s1 + $0x1c4] sm:$0xf]  ;;  %v2801_v25 = vor.u32 %v3942_v16, %v2798_v17 }
  0x43   : > { %v3628_v35 = vld [vmem:[%s6221_s1 + $0x740] sm:$0xf]  ;;  %v4052_v39 = vld [vmem:[%s6221_s1 + $0x42c] sm:$0xf0]  ;;  %v3501_v42 = vor.u32 %v4120_v34, %v3500_v33  ;;  %1843 = vmatpush.bf16.msrb.mxu0 %v3245_v37  ;;  %v2926_v20 = vld [vmem:[%s6221_s1 + $0x1d0] sm:$0xf0] }
  0x44   : > { %v3228_v38 = vld [vmem:[%s6221_s1 + $0x420] sm:$0xf]  ;;  %v4084_v43 = vld [vmem:[%s6221_s1 + $0x52c] sm:$0xf0]  ;;  %v3629_v46 = vor.u32 %v4152_v36, %v3628_v35  ;;  %1856 = vmatpush.bf16.msrb.mxu1 %v3373_v41  ;;  %v4006_v21 = vld [vmem:[%s6221_s1 + $0x2c4] sm:$0xf]  ;;  %v2929_v26 = vor.u32 %v3974_v18, %v2926_v20 }
  0x45   : > { %v3356_v40 = vld [vmem:[%s6221_s1 + $0x520] sm:$0xf]  ;;  %v4116_v45 = vld [vmem:[%s6221_s1 + $0x62c] sm:$0xf0]  ;;  %v3229_v53 = vor.u32 %v4052_v39, %v3228_v38  ;;  %1869 = vmatpush.bf16.msrb.mxu2 %v3501_v42  ;;  %v3054_v22 = vld [vmem:[%s6221_s1 + $0x2d0] sm:$0xf0] }
  0x46   : > { %v3484_v44 = vld [vmem:[%s6221_s1 + $0x620] sm:$0xf]  ;;  %v4649_v47 = vld [vmem:[#allocation1 + $0x12] sm:$0xff]  ;;  %v4663_v52 = vld [vmem:[#allocation1 + $0x9] sm:$0xff]  ;;  %v3357_v56 = vor.u32 %v4084_v43, %v3356_v40  ;;  %1882 = vmatpush.bf16.msrb.mxu3 %v3629_v46  ;;  %v3057_v27 = vor.u32 %v4006_v21, %v3054_v22 }
  0x47   : > { %v4651_v48 = vld [vmem:[#allocation1] sm:$0xff]  ;;  %1820 = vmatmul.bf16.vlgmr.msra.gmra.mxu2 %v4649_v47  ;;  %v4148_v51 = vld [vmem:[%s6221_s1 + $0x72c] sm:$0xf0]  ;;  %v3485_v57 = vor.u32 %v4116_v45, %v3484_v44  ;;  %1807 = vmatmul.bf16.vlgmr.msra.gmra.mxu1 %v4663_v52  ;;  %v3182_v24 = vld [vmem:[%s6221_s1 + $0x3d0] sm:$0xf0] }
  0x48   : > { %v4653_v49 = vld [vmem:[#allocation1 + $0x1b] sm:$0xff]  ;;  %1794 = vmatmul.bf16.vlgmr.msra.gmra.mxu0 %v4651_v48  ;;  %v4048_v55 = vld [vmem:[%s6221_s1 + $0x40c] sm:$0xf0]  ;;  %1857 = vmatpush.bf16.msrb.mxu1 %v3357_v56  ;;  %v4038_v23 = vld [vmem:[%s6221_s1 + $0x3c4] sm:$0xf] }
  0x49   : > { %v3612_v50 = vld [vmem:[%s6221_s1 + $0x720] sm:$0xf]  ;;  %1833 = vmatmul.bf16.vlgmr.msra.gmra.mxu3 %v4653_v49  ;;  %v4080_v59 = vld [vmem:[%s6221_s1 + $0x50c] sm:$0xf0]  ;;  %1844 = vmatpush.bf16.msrb.mxu0 %v3229_v53  ;;  %v3938_v28 = vld [vmem:[%s6221_s1 + $0xa4] sm:$0xf]  ;;  %v3185_v31 = vor.u32 %v4038_v23, %v3182_v24 }
  0x4a   : > { %v3212_v54 = vld [vmem:[%s6221_s1 + $0x400] sm:$0xf]  ;;  %v3613_v61 = vor.u32 %v4148_v51, %v3612_v50  ;;  %v4112_v62 = vld [vmem:[%s6221_s1 + $0x60c] sm:$0xf0]  ;;  %1870 = vmatpush.bf16.msrb.mxu2 %v3485_v57  ;;  %v2782_v29 = vld [vmem:[%s6221_s1 + $0xb0] sm:$0xf0] }
  0x4b   : > { %v3340_v58 = vld [vmem:[%s6221_s1 + $0x500] sm:$0xf]  ;;  %v4144_v0 = vld [vmem:[%s6221_s1 + $0x70c] sm:$0xf0]  ;;  %v3213_v4 = vor.u32 %v4048_v55, %v3212_v54  ;;  %v3970_v30 = vld [vmem:[%s6221_s1 + $0x1a4] sm:$0xf]  ;;  %v2785_v38 = vor.u32 %v3938_v28, %v2782_v29 }
  0x4c   : > { %v3468_v60 = vld [vmem:[%s6221_s1 + $0x600] sm:$0xf]  ;;  %v3341_v8 = vor.u32 %v4080_v59, %v3340_v58  ;;  %1883 = vmatpush.bf16.msrb.mxu3 %v3613_v61  ;;  %v2910_v32 = vld [vmem:[%s6221_s1 + $0x1b0] sm:$0xf0]  ;;  %v4002_v33 = vld [vmem:[%s6221_s1 + $0x2a4] sm:$0xf] }
  0x4d   : > { %v3596_v63 = vld [vmem:[%s6221_s1 + $0x700] sm:$0xf]  ;;  %v3469_v9 = vor.u32 %v4112_v62, %v3468_v60  ;;  %1845 = vmatpush.bf16.msrb.mxu0 %v3213_v4  ;;  %v3038_v34 = vld [vmem:[%s6221_s1 + $0x2b0] sm:$0xf0]  ;;  %v4034_v36 = vld [vmem:[%s6221_s1 + $0x3a4] sm:$0xf]  ;;  %v2913_v42 = vor.u32 %v3970_v30, %v2910_v32 }
  0x4e   : > { %v3597_v12 = vor.u32 %v4144_v0, %v3596_v63  ;;  %1858 = vmatpush.bf16.msrb.mxu1 %v3341_v8  ;;  %v4757_v35 = vld [vmem:[#allocation1 + $0x36] sm:$0xff]  ;;  %v4765_v39 = vld [vmem:[#allocation1 + $0x24] sm:$0xff]  ;;  %v4769_v41 = vld [vmem:[#allocation1 + $0x2d] sm:$0xff]  ;;  %v3041_v43 = vor.u32 %v4002_v33, %v3038_v34 }
  0x4f   : > { %1871 = vmatpush.bf16.msrb.mxu2 %v3469_v9  ;;  %v3166_v37 = vld [vmem:[%s6221_s1 + $0x3b0] sm:$0xf0]  ;;  %v4767_v40 = vld [vmem:[#allocation1 + $0x3f] sm:$0xff] }
  0x50   : > { %1884 = vmatpush.bf16.msrb.mxu3 %v3597_v12  ;;  %v3934_v44 = vld [vmem:[%s6221_s1 + $0x84] sm:$0xf]  ;;  %v2766_v45 = vld [vmem:[%s6221_s1 + $0x90] sm:$0xf0]  ;;  %v3169_v50 = vor.u32 %v4034_v36, %v3166_v37 }
  0x51   : > { %1890 = vmatpush.bf16.msra.mxu0 %v2817_v13  ;;  %v3966_v46 = vld [vmem:[%s6221_s1 + $0x184] sm:$0xf]  ;;  %v2894_v51 = vld [vmem:[%s6221_s1 + $0x190] sm:$0xf0]  ;;  %v2769_v57 = vor.u32 %v3934_v44, %v2766_v45 }
  0x52   : > { %1903 = vmatpush.bf16.msra.mxu1 %v2945_v14  ;;  %v3998_v53 = vld [vmem:[%s6221_s1 + $0x284] sm:$0xf]  ;;  %v3022_v54 = vld [vmem:[%s6221_s1 + $0x290] sm:$0xf0]  ;;  %v2897_v58 = vor.u32 %v3966_v46, %v2894_v51 }
  0x53   : > { %1916 = vmatpush.bf16.msra.mxu2 %v3073_v15  ;;  %v4030_v55 = vld [vmem:[%s6221_s1 + $0x384] sm:$0xf]  ;;  %v3150_v56 = vld [vmem:[%s6221_s1 + $0x390] sm:$0xf0]  ;;  %v3025_v59 = vor.u32 %v3998_v53, %v3022_v54 }
  0x54   : > { %1929 = vmatpush.bf16.msra.mxu3 %v3201_v19  ;;  %v3930_v60 = vld [vmem:[%s6221_s1 + $0x64] sm:$0xf]  ;;  %v2750_v61 = vld [vmem:[%s6221_s1 + $0x70] sm:$0xf0]  ;;  %v3153_v63 = vor.u32 %v4030_v55, %v3150_v56 }
  0x55   : > { %1891 = vmatpush.bf16.msra.mxu0 %v2801_v25  ;;  %v3962_v62 = vld [vmem:[%s6221_s1 + $0x164] sm:$0xf]  ;;  %v2878_v0 = vld [vmem:[%s6221_s1 + $0x170] sm:$0xf0]  ;;  %v2753_v5 = vor.u32 %v3930_v60, %v2750_v61 }
  0x56   : > { %1904 = vmatpush.bf16.msra.mxu1 %v2929_v26  ;;  %v3994_v1 = vld [vmem:[%s6221_s1 + $0x264] sm:$0xf]  ;;  %v3006_v2 = vld [vmem:[%s6221_s1 + $0x270] sm:$0xf0]  ;;  %v2881_v6 = vor.u32 %v3962_v62, %v2878_v0 }
  0x57   : > { %1917 = vmatpush.bf16.msra.mxu2 %v3057_v27  ;;  %1859 = vmatmul.bf16.vlgmr.msrb.gmra.mxu1 %v4769_v41  ;;  %v4026_v3 = vld [vmem:[%s6221_s1 + $0x364] sm:$0xf]  ;;  %v3134_v4 = vld [vmem:[%s6221_s1 + $0x370] sm:$0xf0]  ;;  %v3009_v7 = vor.u32 %v3994_v1, %v3006_v2 }
  0x58   : > { %1930 = vmatpush.bf16.msra.mxu3 %v3185_v31  ;;  %1872 = vmatmul.bf16.vlgmr.msrb.gmra.mxu2 %v4757_v35  ;;  %v3926_v8 = vld [vmem:[%s6221_s1 + $0x44] sm:$0xf]  ;;  %v2734_v9 = vld [vmem:[%s6221_s1 + $0x50] sm:$0xf0]  ;;  %v3137_v11 = vor.u32 %v4026_v3, %v3134_v4 }
  0x59   : > { %1846 = vmatmul.bf16.vlgmr.msrb.gmra.mxu0 %v4765_v39  ;;  %1885 = vmatmul.bf16.vlgmr.msrb.gmra.mxu3 %v4767_v40  ;;  %v3958_v10 = vld [vmem:[%s6221_s1 + $0x144] sm:$0xf]  ;;  %v2862_v12 = vld [vmem:[%s6221_s1 + $0x150] sm:$0xf0]  ;;  %v2737_v17 = vor.u32 %v3926_v8, %v2734_v9 }
  0x5a   : > { %1892 = vmatpush.bf16.msra.mxu0 %v2785_v38  ;;  %1905 = vmatpush.bf16.msra.mxu1 %v2913_v42  ;;  %v3990_v13 = vld [vmem:[%s6221_s1 + $0x244] sm:$0xf]  ;;  %v2990_v14 = vld [vmem:[%s6221_s1 + $0x250] sm:$0xf0]  ;;  %v2865_v18 = vor.u32 %v3958_v10, %v2862_v12 }
  0x5b   : > { %1918 = vmatpush.bf16.msra.mxu2 %v3041_v43  ;;  %v4022_v15 = vld [vmem:[%s6221_s1 + $0x344] sm:$0xf]  ;;  %v3118_v16 = vld [vmem:[%s6221_s1 + $0x350] sm:$0xf0]  ;;  %v2993_v19 = vor.u32 %v3990_v13, %v2990_v14 }
  0x5c   : > { %1931 = vmatpush.bf16.msra.mxu3 %v3169_v50  ;;  %v3922_v20 = vld [vmem:[%s6221_s1 + $0x24] sm:$0xf]  ;;  %v2718_v21 = vld [vmem:[%s6221_s1 + $0x30] sm:$0xf0]  ;;  %v3121_v23 = vor.u32 %v4022_v15, %v3118_v16 }
  0x5d   : > { %v3954_v22 = vld [vmem:[%s6221_s1 + $0x124] sm:$0xf]  ;;  %v2846_v24 = vld [vmem:[%s6221_s1 + $0x130] sm:$0xf0]  ;;  %v2721_v29 = vor.u32 %v3922_v20, %v2718_v21 }
  0x5e   : > { %1893 = vmatpush.bf16.msra.mxu0 %v2769_v57  ;;  %1906 = vmatpush.bf16.msra.mxu1 %v2897_v58  ;;  %v3986_v25 = vld [vmem:[%s6221_s1 + $0x224] sm:$0xf]  ;;  %v2974_v26 = vld [vmem:[%s6221_s1 + $0x230] sm:$0xf0]  ;;  %v2849_v32 = vor.u32 %v3954_v22, %v2846_v24 }
  0x5f   : > { %1919 = vmatpush.bf16.msra.mxu2 %v3025_v59  ;;  %v4018_v27 = vld [vmem:[%s6221_s1 + $0x324] sm:$0xf]  ;;  %v3102_v28 = vld [vmem:[%s6221_s1 + $0x330] sm:$0xf0]  ;;  %v2977_v33 = vor.u32 %v3986_v25, %v2974_v26 }
  0x60   : > { %1932 = vmatpush.bf16.msra.mxu3 %v3153_v63  ;;  %v3918_v30 = vld [vmem:[%s6221_s1 + $0x4] sm:$0xf]  ;;  %v2702_v31 = vld [vmem:[%s6221_s1 + $0x10] sm:$0xf0]  ;;  %v3105_v38 = vor.u32 %v4018_v27, %v3102_v28 }
  0x61   : > { %v3950_v34 = vld [vmem:[%s6221_s1 + $0x104] sm:$0xf]  ;;  %v2830_v36 = vld [vmem:[%s6221_s1 + $0x110] sm:$0xf0]  ;;  %v2705_v51 = vor.u32 %v3918_v30, %v2702_v31 }
  0x62   : > { %1894 = vmatpush.bf16.msra.mxu0 %v2753_v5  ;;  %1907 = vmatpush.bf16.msra.mxu1 %v2881_v6  ;;  %v3982_v37 = vld [vmem:[%s6221_s1 + $0x204] sm:$0xf]  ;;  %v2958_v42 = vld [vmem:[%s6221_s1 + $0x210] sm:$0xf0]  ;;  %v2833_v56 = vor.u32 %v3950_v34, %v2830_v36 }
  0x63   : > { %1920 = vmatpush.bf16.msra.mxu2 %v3009_v7  ;;  %v4014_v43 = vld [vmem:[%s6221_s1 + $0x304] sm:$0xf]  ;;  %v3086_v44 = vld [vmem:[%s6221_s1 + $0x310] sm:$0xf0]  ;;  %v2961_v57 = vor.u32 %v3982_v37, %v2958_v42 }
  0x64   : > { %1933 = vmatpush.bf16.msra.mxu3 %v3137_v11  ;;  %v4074_v45 = vld [vmem:[%s6221_s1 + $0x4e4] sm:$0xf]  ;;  %v3326_v46 = vld [vmem:[%s6221_s1 + $0x4f0] sm:$0xf0]  ;;  %v3089_v60 = vor.u32 %v4014_v43, %v3086_v44 }
  0x65   : > { %v4106_v50 = vld [vmem:[%s6221_s1 + $0x5e4] sm:$0xf]  ;;  %v3454_v53 = vld [vmem:[%s6221_s1 + $0x5f0] sm:$0xf0]  ;;  %v3329_v61 = vor.u32 %v4074_v45, %v3326_v46 }
  0x66   : > { %1895 = vmatpush.bf16.msra.mxu0 %v2737_v17  ;;  %1908 = vmatpush.bf16.msra.mxu1 %v2865_v18  ;;  %v4138_v54 = vld [vmem:[%s6221_s1 + $0x6e4] sm:$0xf]  ;;  %v3582_v55 = vld [vmem:[%s6221_s1 + $0x6f0] sm:$0xf0]  ;;  %v3457_v62 = vor.u32 %v4106_v50, %v3454_v53 }
  0x67   : > { %1921 = vmatpush.bf16.msra.mxu2 %v2993_v19  ;;  %v4170_v58 = vld [vmem:[%s6221_s1 + $0x7e4] sm:$0xf]  ;;  %v3710_v59 = vld [vmem:[%s6221_s1 + $0x7f0] sm:$0xf0]  ;;  %v3585_v63 = vor.u32 %v4138_v54, %v3582_v55 }
  0x68   : > { %1934 = vmatpush.bf16.msra.mxu3 %v3121_v23  ;;  %v4070_v0 = vld [vmem:[%s6221_s1 + $0x4c4] sm:$0xf]  ;;  %v3310_v1 = vld [vmem:[%s6221_s1 + $0x4d0] sm:$0xf0]  ;;  %v3713_v3 = vor.u32 %v4170_v58, %v3710_v59 }
  0x69   : > { %v4102_v2 = vld [vmem:[%s6221_s1 + $0x5c4] sm:$0xf]  ;;  %v3438_v4 = vld [vmem:[%s6221_s1 + $0x5d0] sm:$0xf0]  ;;  %v3313_v9 = vor.u32 %v4070_v0, %v3310_v1 }
  0x6a   : > { %1896 = vmatpush.bf16.msra.mxu0 %v2721_v29  ;;  %1909 = vmatpush.bf16.msra.mxu1 %v2849_v32  ;;  %v4134_v5 = vld [vmem:[%s6221_s1 + $0x6c4] sm:$0xf]  ;;  %v3566_v6 = vld [vmem:[%s6221_s1 + $0x6d0] sm:$0xf0]  ;;  %v3441_v10 = vor.u32 %v4102_v2, %v3438_v4 }
  0x6b   : > { %1922 = vmatpush.bf16.msra.mxu2 %v2977_v33  ;;  %v4166_v7 = vld [vmem:[%s6221_s1 + $0x7c4] sm:$0xf]  ;;  %v3694_v8 = vld [vmem:[%s6221_s1 + $0x7d0] sm:$0xf0]  ;;  %v3569_v11 = vor.u32 %v4134_v5, %v3566_v6 }
  0x6c   : > { %1935 = vmatpush.bf16.msra.mxu3 %v3105_v38  ;;  %v4066_v12 = vld [vmem:[%s6221_s1 + $0x4a4] sm:$0xf]  ;;  %v3294_v13 = vld [vmem:[%s6221_s1 + $0x4b0] sm:$0xf0]  ;;  %v3697_v15 = vor.u32 %v4166_v7, %v3694_v8 }
  0x6d   : > { %v4098_v14 = vld [vmem:[%s6221_s1 + $0x5a4] sm:$0xf]  ;;  %v3422_v16 = vld [vmem:[%s6221_s1 + $0x5b0] sm:$0xf0]  ;;  %v3297_v21 = vor.u32 %v4066_v12, %v3294_v13 }
  0x6e   : > { %1897 = vmatpush.bf16.msra.mxu0 %v2705_v51  ;;  %1910 = vmatpush.bf16.msra.mxu1 %v2833_v56  ;;  %v4130_v17 = vld [vmem:[%s6221_s1 + $0x6a4] sm:$0xf]  ;;  %v3550_v18 = vld [vmem:[%s6221_s1 + $0x6b0] sm:$0xf0]  ;;  %v3425_v22 = vor.u32 %v4098_v14, %v3422_v16 }
  0x6f   : > { %1923 = vmatpush.bf16.msra.mxu2 %v2961_v57  ;;  %v4162_v19 = vld [vmem:[%s6221_s1 + $0x7a4] sm:$0xf]  ;;  %v3678_v20 = vld [vmem:[%s6221_s1 + $0x7b0] sm:$0xf0]  ;;  %v3553_v23 = vor.u32 %v4130_v17, %v3550_v18 }
  0x70   : > { %1936 = vmatpush.bf16.msra.mxu3 %v3089_v60  ;;  %v4062_v24 = vld [vmem:[%s6221_s1 + $0x484] sm:$0xf]  ;;  %v3278_v25 = vld [vmem:[%s6221_s1 + $0x490] sm:$0xf0]  ;;  %v3681_v27 = vor.u32 %v4162_v19, %v3678_v20 }
  0x71   : > { %1898 = vmatmul.bf16.vlgmr.msra.gmra.mxu0 %v4651_v48  ;;  %1911 = vmatmul.bf16.vlgmr.msra.gmra.mxu1 %v4663_v52  ;;  %v4094_v26 = vld [vmem:[%s6221_s1 + $0x584] sm:$0xf]  ;;  %v3406_v28 = vld [vmem:[%s6221_s1 + $0x590] sm:$0xf0]  ;;  %v3281_v33 = vor.u32 %v4062_v24, %v3278_v25  ;;  %v2820_v25 = vld [vmem:[%s6221_s1 + $0xe8] sm:$0xf] }
  0x72   : > { %1942 = vmatpush.bf16.msrb.mxu0 %v3329_v61  ;;  %1955 = vmatpush.bf16.msrb.mxu1 %v3457_v62  ;;  %v4126_v29 = vld [vmem:[%s6221_s1 + $0x684] sm:$0xf]  ;;  %v3534_v30 = vld [vmem:[%s6221_s1 + $0x690] sm:$0xf0]  ;;  %v3409_v34 = vor.u32 %v4094_v26, %v3406_v28  ;;  %v3949_v26 = vld [vmem:[%s6221_s1 + $0xf4] sm:$0xf0] }
  0x73   : > { %1968 = vmatpush.bf16.msrb.mxu2 %v3585_v63  ;;  %1937 = vmatmul.bf16.vlgmr.msra.gmra.mxu3 %v4653_v49  ;;  %v4158_v31 = vld [vmem:[%s6221_s1 + $0x784] sm:$0xf]  ;;  %v3662_v32 = vld [vmem:[%s6221_s1 + $0x790] sm:$0xf0]  ;;  %v3537_v36 = vor.u32 %v4126_v29, %v3534_v30  ;;  %v3981_v29 = vld [vmem:[%s6221_s1 + $0x1f4] sm:$0xf0] }
  0x74   : > { %1981 = vmatpush.bf16.msrb.mxu3 %v3713_v3  ;;  %1924 = vmatmul.bf16.vlgmr.msra.gmra.mxu2 %v4649_v47  ;;  %v4058_v37 = vld [vmem:[%s6221_s1 + $0x464] sm:$0xf]  ;;  %v3262_v38 = vld [vmem:[%s6221_s1 + $0x470] sm:$0xf0]  ;;  %v3665_v43 = vor.u32 %v4158_v31, %v3662_v32  ;;  %v3076_v30 = vld [vmem:[%s6221_s1 + $0x2e8] sm:$0xf] }
  0x75   : > { %v4090_v42 = vld [vmem:[%s6221_s1 + $0x564] sm:$0xf]  ;;  %v3390_v44 = vld [vmem:[%s6221_s1 + $0x570] sm:$0xf0]  ;;  %v3265_v53 = vor.u32 %v4058_v37, %v3262_v38  ;;  %v4013_v31 = vld [vmem:[%s6221_s1 + $0x2f4] sm:$0xf0]  ;;  %v2821_v38 = vor.u32 %v3949_v26, %v2820_v25 }
  0x76   : > { %1943 = vmatpush.bf16.msrb.mxu0 %v3313_v9  ;;  %1956 = vmatpush.bf16.msrb.mxu1 %v3441_v10  ;;  %v4122_v45 = vld [vmem:[%s6221_s1 + $0x664] sm:$0xf]  ;;  %v3518_v46 = vld [vmem:[%s6221_s1 + $0x670] sm:$0xf0]  ;;  %v3393_v54 = vor.u32 %v4090_v42, %v3390_v44  ;;  %v2804_v44 = vld [vmem:[%s6221_s1 + $0xc8] sm:$0xf] }
  0x77   : > { %1969 = vmatpush.bf16.msrb.mxu2 %v3569_v11  ;;  %v4154_v50 = vld [vmem:[%s6221_s1 + $0x764] sm:$0xf]  ;;  %v3646_v51 = vld [vmem:[%s6221_s1 + $0x770] sm:$0xf0]  ;;  %v3521_v55 = vor.u32 %v4122_v45, %v3518_v46  ;;  %v3945_v45 = vld [vmem:[%s6221_s1 + $0xd4] sm:$0xf0] }
  0x78   : > { %1982 = vmatpush.bf16.msrb.mxu3 %v3697_v15  ;;  %v4054_v56 = vld [vmem:[%s6221_s1 + $0x444] sm:$0xf]  ;;  %v3246_v57 = vld [vmem:[%s6221_s1 + $0x450] sm:$0xf0]  ;;  %v3649_v59 = vor.u32 %v4154_v50, %v3646_v51  ;;  %v2932_v46 = vld [vmem:[%s6221_s1 + $0x1c8] sm:$0xf] }
  0x79   : > { %v4086_v58 = vld [vmem:[%s6221_s1 + $0x544] sm:$0xf]  ;;  %v3374_v60 = vld [vmem:[%s6221_s1 + $0x550] sm:$0xf0]  ;;  %v3249_v1 = vor.u32 %v4054_v56, %v3246_v57  ;;  %v3977_v51 = vld [vmem:[%s6221_s1 + $0x1d4] sm:$0xf0]  ;;  %v2805_v57 = vor.u32 %v3945_v45, %v2804_v44 }
  0x7a   : > { %1944 = vmatpush.bf16.msrb.mxu0 %v3297_v21  ;;  %1957 = vmatpush.bf16.msrb.mxu1 %v3425_v22  ;;  %v4118_v61 = vld [vmem:[%s6221_s1 + $0x644] sm:$0xf]  ;;  %v3502_v62 = vld [vmem:[%s6221_s1 + $0x650] sm:$0xf0]  ;;  %v3377_v2 = vor.u32 %v4086_v58, %v3374_v60  ;;  %v4041_v56 = vld [vmem:[%s6221_s1 + $0x3d4] sm:$0xf0]  ;;  %v2933_v58 = vor.u32 %v3977_v51, %v2932_v46 }
  0x7b   : > { %1970 = vmatpush.bf16.msrb.mxu2 %v3553_v23  ;;  %v4150_v63 = vld [vmem:[%s6221_s1 + $0x744] sm:$0xf]  ;;  %v3630_v0 = vld [vmem:[%s6221_s1 + $0x750] sm:$0xf0]  ;;  %v3505_v3 = vor.u32 %v4118_v61, %v3502_v62  ;;  %v2788_v60 = vld [vmem:[%s6221_s1 + $0xa8] sm:$0xf] }
  0x7c   : > { %1983 = vmatpush.bf16.msrb.mxu3 %v3681_v27  ;;  %v4050_v4 = vld [vmem:[%s6221_s1 + $0x424] sm:$0xf]  ;;  %v3230_v5 = vld [vmem:[%s6221_s1 + $0x430] sm:$0xf0]  ;;  %v3633_v7 = vor.u32 %v4150_v63, %v3630_v0  ;;  %v2948_v27 = vld [vmem:[%s6221_s1 + $0x1e8] sm:$0xf] }
  0x7d   : > { %v4082_v6 = vld [vmem:[%s6221_s1 + $0x524] sm:$0xf]  ;;  %v3358_v8 = vld [vmem:[%s6221_s1 + $0x530] sm:$0xf0]  ;;  %v3233_v13 = vor.u32 %v4050_v4, %v3230_v5  ;;  %v2949_v42 = vor.u32 %v3981_v29, %v2948_v27  ;;  %v3941_v61 = vld [vmem:[%s6221_s1 + $0xb4] sm:$0xf0] }
  0x7e   : > { %1945 = vmatpush.bf16.msrb.mxu0 %v3281_v33  ;;  %1958 = vmatpush.bf16.msrb.mxu1 %v3409_v34  ;;  %v4114_v9 = vld [vmem:[%s6221_s1 + $0x624] sm:$0xf]  ;;  %v3486_v10 = vld [vmem:[%s6221_s1 + $0x630] sm:$0xf0]  ;;  %v3361_v16 = vor.u32 %v4082_v6, %v3358_v8  ;;  %v3204_v34 = vld [vmem:[%s6221_s1 + $0x3e8] sm:$0xf]  ;;  %v2789_v4 = vor.u32 %v3941_v61, %v2788_v60 }
  0x7f   : > { %1971 = vmatpush.bf16.msrb.mxu2 %v3537_v36  ;;  %v4146_v11 = vld [vmem:[%s6221_s1 + $0x724] sm:$0xf]  ;;  %v3614_v12 = vld [vmem:[%s6221_s1 + $0x730] sm:$0xf0]  ;;  %v3489_v17 = vor.u32 %v4114_v9, %v3486_v10  ;;  %v4045_v36 = vld [vmem:[%s6221_s1 + $0x3f4] sm:$0xf0] }
  0x80   : > { %1984 = vmatpush.bf16.msrb.mxu3 %v3665_v43  ;;  %v4046_v14 = vld [vmem:[%s6221_s1 + $0x404] sm:$0xf]  ;;  %v3214_v15 = vld [vmem:[%s6221_s1 + $0x410] sm:$0xf0]  ;;  %v3617_v21 = vor.u32 %v4146_v11, %v3614_v12  ;;  %v3077_v43 = vor.u32 %v4013_v31, %v3076_v30  ;;  %v3205_v50 = vor.u32 %v4045_v36, %v3204_v34  ;;  %v2916_v62 = vld [vmem:[%s6221_s1 + $0x1a8] sm:$0xf] }
  0x81   : > { %v4078_v18 = vld [vmem:[%s6221_s1 + $0x504] sm:$0xf]  ;;  %v3342_v19 = vld [vmem:[%s6221_s1 + $0x510] sm:$0xf0]  ;;  %v3217_v28 = vor.u32 %v4046_v14, %v3214_v15  ;;  %v3973_v0 = vld [vmem:[%s6221_s1 + $0x1b4] sm:$0xf0] }
  0x82   : > { %1946 = vmatpush.bf16.msrb.mxu0 %v3265_v53  ;;  %1959 = vmatpush.bf16.msrb.mxu1 %v3393_v54  ;;  %v4110_v20 = vld [vmem:[%s6221_s1 + $0x604] sm:$0xf]  ;;  %v3470_v22 = vld [vmem:[%s6221_s1 + $0x610] sm:$0xf0]  ;;  %v3345_v32 = vor.u32 %v4078_v18, %v3342_v19  ;;  %v3060_v53 = vld [vmem:[%s6221_s1 + $0x2c8] sm:$0xf]  ;;  %v2917_v5 = vor.u32 %v3973_v0, %v2916_v62 }
  0x83   : > { %1972 = vmatpush.bf16.msrb.mxu2 %v3521_v55  ;;  %v4142_v23 = vld [vmem:[%s6221_s1 + $0x704] sm:$0xf]  ;;  %v3598_v24 = vld [vmem:[%s6221_s1 + $0x710] sm:$0xf0]  ;;  %v3473_v33 = vor.u32 %v4110_v20, %v3470_v22  ;;  %v4009_v54 = vld [vmem:[%s6221_s1 + $0x2d4] sm:$0xf0] }
  0x84   : > { %1985 = vmatpush.bf16.msrb.mxu3 %v3649_v59  ;;  %v3601_v37 = vor.u32 %v4142_v23, %v3598_v24  ;;  %v3188_v55 = vld [vmem:[%s6221_s1 + $0x3c8] sm:$0xf]  ;;  %v3061_v59 = vor.u32 %v4009_v54, %v3060_v53  ;;  %v3937_v8 = vld [vmem:[%s6221_s1 + $0x94] sm:$0xf0] }
  0x85   : > { %v3189_v63 = vor.u32 %v4041_v56, %v3188_v55  ;;  %v3028_v9 = vld [vmem:[%s6221_s1 + $0x288] sm:$0xf]  ;;  %v4001_v10 = vld [vmem:[%s6221_s1 + $0x294] sm:$0xf0] }
  0x86   : > { %1947 = vmatpush.bf16.msrb.mxu0 %v3249_v1  ;;  %1960 = vmatpush.bf16.msrb.mxu1 %v3377_v2  ;;  %v3044_v1 = vld [vmem:[%s6221_s1 + $0x2a8] sm:$0xf]  ;;  %v4005_v2 = vld [vmem:[%s6221_s1 + $0x2b4] sm:$0xf0]  ;;  %v3029_v15 = vor.u32 %v4001_v10, %v3028_v9 }
  0x87   : > { %1973 = vmatpush.bf16.msrb.mxu2 %v3505_v3  ;;  %v3172_v3 = vld [vmem:[%s6221_s1 + $0x3a8] sm:$0xf]  ;;  %v3045_v6 = vor.u32 %v4005_v2, %v3044_v1  ;;  %v4033_v12 = vld [vmem:[%s6221_s1 + $0x394] sm:$0xf0] }
  0x88   : > { %1986 = vmatpush.bf16.msrb.mxu3 %v3633_v7  ;;  %v2772_v7 = vld [vmem:[%s6221_s1 + $0x88] sm:$0xf]  ;;  %v3965_v20 = vld [vmem:[%s6221_s1 + $0x174] sm:$0xf0] }
  0x89   : > { %v3156_v11 = vld [vmem:[%s6221_s1 + $0x388] sm:$0xf]  ;;  %v3997_v22 = vld [vmem:[%s6221_s1 + $0x274] sm:$0xf0] }
  0x8a   : > { %1948 = vmatpush.bf16.msrb.mxu0 %v3233_v13  ;;  %1961 = vmatpush.bf16.msrb.mxu1 %v3361_v16  ;;  %v2773_v13 = vor.u32 %v3937_v8, %v2772_v7  ;;  %v2756_v16 = vld [vmem:[%s6221_s1 + $0x68] sm:$0xf]  ;;  %v3157_v19 = vor.u32 %v4033_v12, %v3156_v11  ;;  %v4029_v24 = vld [vmem:[%s6221_s1 + $0x374] sm:$0xf0] }
  0x8b   : > { %1974 = vmatpush.bf16.msrb.mxu2 %v3489_v17  ;;  %v3933_v17 = vld [vmem:[%s6221_s1 + $0x74] sm:$0xf0]  ;;  %v2884_v18 = vld [vmem:[%s6221_s1 + $0x168] sm:$0xf] }
  0x8c   : > { %1987 = vmatpush.bf16.msrb.mxu3 %v3617_v21  ;;  %v3012_v21 = vld [vmem:[%s6221_s1 + $0x268] sm:$0xf]  ;;  %v2757_v25 = vor.u32 %v3933_v17, %v2756_v16  ;;  %v2885_v26 = vor.u32 %v3965_v20, %v2884_v18  ;;  %v3929_v29 = vld [vmem:[%s6221_s1 + $0x54] sm:$0xf0] }
  0x8d   : > { %v3140_v23 = vld [vmem:[%s6221_s1 + $0x368] sm:$0xf]  ;;  %v3013_v27 = vor.u32 %v3997_v22, %v3012_v21  ;;  %v3993_v34 = vld [vmem:[%s6221_s1 + $0x254] sm:$0xf0] }
  0x8e   : > { %1949 = vmatpush.bf16.msrb.mxu0 %v3217_v28  ;;  %1962 = vmatpush.bf16.msrb.mxu1 %v3345_v32  ;;  %v2740_v28 = vld [vmem:[%s6221_s1 + $0x48] sm:$0xf]  ;;  %v3141_v31 = vor.u32 %v4029_v24, %v3140_v23  ;;  %v3961_v32 = vld [vmem:[%s6221_s1 + $0x154] sm:$0xf0] }
  0x8f   : > { %1975 = vmatpush.bf16.msrb.mxu2 %v3473_v33  ;;  %v2868_v30 = vld [vmem:[%s6221_s1 + $0x148] sm:$0xf]  ;;  %v3925_v45 = vld [vmem:[%s6221_s1 + $0x34] sm:$0xf0] }
  0x90   : > { %1988 = vmatpush.bf16.msrb.mxu3 %v3601_v37  ;;  %v2996_v33 = vld [vmem:[%s6221_s1 + $0x248] sm:$0xf]  ;;  %v4025_v37 = vld [vmem:[%s6221_s1 + $0x354] sm:$0xf0] }
  0x91   : > { %1950 = vmatmul.bf16.vlgmr.msrb.gmra.mxu0 %v4765_v39  ;;  %1963 = vmatmul.bf16.vlgmr.msrb.gmra.mxu1 %v4769_v41  ;;  %v2900_v39 = vld [vmem:[%s6221_s1 + $0x188] sm:$0xf]  ;;  %v3969_v41 = vld [vmem:[%s6221_s1 + $0x194] sm:$0xf0] }
  0x92   : > { %1994 = vmatpush.bf16.msra.mxu0 %v2821_v38  ;;  %2007 = vmatpush.bf16.msra.mxu1 %v2949_v42  ;;  %v2901_v14 = vor.u32 %v3969_v41, %v2900_v39  ;;  %v3124_v36 = vld [vmem:[%s6221_s1 + $0x348] sm:$0xf]  ;;  %v2741_v38 = vor.u32 %v3929_v29, %v2740_v28  ;;  %v2869_v42 = vor.u32 %v3961_v32, %v2868_v30  ;;  %v3957_v51 = vld [vmem:[%s6221_s1 + $0x134] sm:$0xf0] }
  0x93   : > { %2020 = vmatpush.bf16.msra.mxu2 %v3077_v43  ;;  %1989 = vmatmul.bf16.vlgmr.msrb.gmra.mxu3 %v4767_v40  ;;  %v2997_v43 = vor.u32 %v3993_v34, %v2996_v33  ;;  %v2724_v44 = vld [vmem:[%s6221_s1 + $0x28] sm:$0xf]  ;;  %v3989_v54 = vld [vmem:[%s6221_s1 + $0x234] sm:$0xf0] }
  0x94   : > { %2033 = vmatpush.bf16.msra.mxu3 %v3205_v50  ;;  %1976 = vmatmul.bf16.vlgmr.msrb.gmra.mxu2 %v4757_v35  ;;  %v4037_v35 = vld [vmem:[%s6221_s1 + $0x3b4] sm:$0xf0]  ;;  %v2852_v46 = vld [vmem:[%s6221_s1 + $0x128] sm:$0xf]  ;;  %v3125_v50 = vor.u32 %v4025_v37, %v3124_v36 }
  0x95   : > { %v3173_v40 = vor.u32 %v4037_v35, %v3172_v3  ;;  %v2980_v53 = vld [vmem:[%s6221_s1 + $0x228] sm:$0xf]  ;;  %v4021_v56 = vld [vmem:[%s6221_s1 + $0x334] sm:$0xf0]  ;;  %v2853_v60 = vor.u32 %v3957_v51, %v2852_v46 }
  0x96   : > { %1995 = vmatpush.bf16.msra.mxu0 %v2805_v57  ;;  %2008 = vmatpush.bf16.msra.mxu1 %v2933_v58  ;;  %v3108_v55 = vld [vmem:[%s6221_s1 + $0x328] sm:$0xf]  ;;  %v2725_v57 = vor.u32 %v3925_v45, %v2724_v44  ;;  %v2981_v61 = vor.u32 %v3989_v54, %v2980_v53  ;;  %v3985_v2 = vld [vmem:[%s6221_s1 + $0x214] sm:$0xf0] }
  0x97   : > { %2021 = vmatpush.bf16.msra.mxu2 %v3061_v59  ;;  %v2708_v58 = vld [vmem:[%s6221_s1 + $0x8] sm:$0xf]  ;;  %v3921_v59 = vld [vmem:[%s6221_s1 + $0x14] sm:$0xf0]  ;;  %v3109_v1 = vor.u32 %v4021_v56, %v3108_v55 }
  0x98   : > { %2034 = vmatpush.bf16.msra.mxu3 %v3189_v63  ;;  %v2836_v62 = vld [vmem:[%s6221_s1 + $0x108] sm:$0xf]  ;;  %v3953_v63 = vld [vmem:[%s6221_s1 + $0x114] sm:$0xf0]  ;;  %v2709_v7 = vor.u32 %v3921_v59, %v2708_v58 }
  0x99   : > { %v2964_v0 = vld [vmem:[%s6221_s1 + $0x208] sm:$0xf]  ;;  %v4017_v35 = vld [vmem:[%s6221_s1 + $0x314] sm:$0xf0]  ;;  %v2837_v41 = vor.u32 %v3953_v63, %v2836_v62 }
  0x9a   : > { %1996 = vmatpush.bf16.msra.mxu0 %v2789_v4  ;;  %2009 = vmatpush.bf16.msra.mxu1 %v2917_v5  ;;  %v3092_v3 = vld [vmem:[%s6221_s1 + $0x308] sm:$0xf]  ;;  %v4077_v5 = vld [vmem:[%s6221_s1 + $0x4f4] sm:$0xf0]  ;;  %v2965_v9 = vor.u32 %v3985_v2, %v2964_v0 }
  0x9b   : > { %2022 = vmatpush.bf16.msra.mxu2 %v3045_v6  ;;  %v3332_v4 = vld [vmem:[%s6221_s1 + $0x4e8] sm:$0xf]  ;;  %v4109_v8 = vld [vmem:[%s6221_s1 + $0x5f4] sm:$0xf0]  ;;  %v3093_v12 = vor.u32 %v4017_v35, %v3092_v3 }
  0x9c   : > { %2035 = vmatpush.bf16.msra.mxu3 %v3173_v40  ;;  %v3460_v6 = vld [vmem:[%s6221_s1 + $0x5e8] sm:$0xf]  ;;  %v4141_v40 = vld [vmem:[%s6221_s1 + $0x6f4] sm:$0xf0] }
  0x9d   : > { %v3588_v39 = vld [vmem:[%s6221_s1 + $0x6e8] sm:$0xf]  ;;  %v4173_v11 = vld [vmem:[%s6221_s1 + $0x7f4] sm:$0xf0] }
  0x9e   : > { %1997 = vmatpush.bf16.msra.mxu0 %v2773_v13  ;;  %2010 = vmatpush.bf16.msra.mxu1 %v2901_v14  ;;  %v3716_v10 = vld [vmem:[%s6221_s1 + $0x7e8] sm:$0xf]  ;;  %v3333_v13 = vor.u32 %v4077_v5, %v3332_v4  ;;  %v3461_v14 = vor.u32 %v4109_v8, %v3460_v6  ;;  %v4073_v17 = vld [vmem:[%s6221_s1 + $0x4d4] sm:$0xf0] }
  0x9f   : > { %2023 = vmatpush.bf16.msra.mxu2 %v3029_v15  ;;  %v3589_v15 = vor.u32 %v4141_v40, %v3588_v39  ;;  %v3316_v16 = vld [vmem:[%s6221_s1 + $0x4c8] sm:$0xf]  ;;  %v4105_v20 = vld [vmem:[%s6221_s1 + $0x5d4] sm:$0xf0] }
  0xa0   : > { %2036 = vmatpush.bf16.msra.mxu3 %v3157_v19  ;;  %v3444_v18 = vld [vmem:[%s6221_s1 + $0x5c8] sm:$0xf]  ;;  %v3717_v19 = vor.u32 %v4173_v11, %v3716_v10  ;;  %v4137_v22 = vld [vmem:[%s6221_s1 + $0x6d4] sm:$0xf0] }
  0xa1   : > { %v3572_v21 = vld [vmem:[%s6221_s1 + $0x6c8] sm:$0xf]  ;;  %v4169_v24 = vld [vmem:[%s6221_s1 + $0x7d4] sm:$0xf0] }
  0xa2   : > { %1998 = vmatpush.bf16.msra.mxu0 %v2757_v25  ;;  %2011 = vmatpush.bf16.msra.mxu1 %v2885_v26  ;;  %v3700_v23 = vld [vmem:[%s6221_s1 + $0x7c8] sm:$0xf]  ;;  %v3317_v25 = vor.u32 %v4073_v17, %v3316_v16  ;;  %v3445_v26 = vor.u32 %v4105_v20, %v3444_v18  ;;  %v4069_v29 = vld [vmem:[%s6221_s1 + $0x4b4] sm:$0xf0] }
  0xa3   : > { %2024 = vmatpush.bf16.msra.mxu2 %v3013_v27  ;;  %v3573_v27 = vor.u32 %v4137_v22, %v3572_v21  ;;  %v3300_v28 = vld [vmem:[%s6221_s1 + $0x4a8] sm:$0xf]  ;;  %v4101_v32 = vld [vmem:[%s6221_s1 + $0x5b4] sm:$0xf0] }
  0xa4   : > { %2037 = vmatpush.bf16.msra.mxu3 %v3141_v31  ;;  %v3428_v30 = vld [vmem:[%s6221_s1 + $0x5a8] sm:$0xf]  ;;  %v3701_v31 = vor.u32 %v4169_v24, %v3700_v23  ;;  %v4133_v34 = vld [vmem:[%s6221_s1 + $0x6b4] sm:$0xf0] }
  0xa5   : > { %v3556_v33 = vld [vmem:[%s6221_s1 + $0x6a8] sm:$0xf]  ;;  %v4165_v37 = vld [vmem:[%s6221_s1 + $0x7b4] sm:$0xf0] }
  0xa6   : > { %1999 = vmatpush.bf16.msra.mxu0 %v2741_v38  ;;  %2012 = vmatpush.bf16.msra.mxu1 %v2869_v42  ;;  %v3684_v36 = vld [vmem:[%s6221_s1 + $0x7a8] sm:$0xf]  ;;  %v3301_v38 = vor.u32 %v4069_v29, %v3300_v28  ;;  %v3429_v42 = vor.u32 %v4101_v32, %v3428_v30  ;;  %v4065_v44 = vld [vmem:[%s6221_s1 + $0x494] sm:$0xf0] }
  0xa7   : > { %2025 = vmatpush.bf16.msra.mxu2 %v2997_v43  ;;  %v3284_v43 = vld [vmem:[%s6221_s1 + $0x488] sm:$0xf]  ;;  %v4129_v46 = vld [vmem:[%s6221_s1 + $0x694] sm:$0xf0] }
  0xa8   : > { %2038 = vmatpush.bf16.msra.mxu3 %v3125_v50  ;;  %v3540_v45 = vld [vmem:[%s6221_s1 + $0x688] sm:$0xf]  ;;  %v4161_v51 = vld [vmem:[%s6221_s1 + $0x794] sm:$0xf0]  ;;  %v3285_v53 = vor.u32 %v4065_v44, %v3284_v43  ;;  %v4011_v43 = vld [vmem:[%s6221_s1 + $0x2ec] sm:$0xf] }
  0xa9   : > { %v3668_v50 = vld [vmem:[%s6221_s1 + $0x788] sm:$0xf]  ;;  %v3541_v55 = vor.u32 %v4129_v46, %v3540_v45  ;;  %v4125_v62 = vld [vmem:[%s6221_s1 + $0x674] sm:$0xf0]  ;;  %v3078_v44 = vld [vmem:[%s6221_s1 + $0x2f8] sm:$0xf0] }
  0xaa   : > { %2000 = vmatpush.bf16.msra.mxu0 %v2725_v57  ;;  %2013 = vmatpush.bf16.msra.mxu1 %v2853_v60  ;;  %v3268_v56 = vld [vmem:[%s6221_s1 + $0x468] sm:$0xf]  ;;  %v4061_v57 = vld [vmem:[%s6221_s1 + $0x474] sm:$0xf0]  ;;  %v3669_v59 = vor.u32 %v4161_v51, %v3668_v50  ;;  %v4043_v45 = vld [vmem:[%s6221_s1 + $0x3ec] sm:$0xf] }
  0xab   : > { %2026 = vmatpush.bf16.msra.mxu2 %v2981_v61  ;;  %v3396_v58 = vld [vmem:[%s6221_s1 + $0x568] sm:$0xf]  ;;  %v4093_v60 = vld [vmem:[%s6221_s1 + $0x574] sm:$0xf0]  ;;  %v3206_v46 = vld [vmem:[%s6221_s1 + $0x3f8] sm:$0xf0] }
  0xac   : > { %2039 = vmatpush.bf16.msra.mxu3 %v3109_v1  ;;  %v3524_v61 = vld [vmem:[%s6221_s1 + $0x668] sm:$0xf]  ;;  %v4157_v0 = vld [vmem:[%s6221_s1 + $0x774] sm:$0xf0]  ;;  %v3269_v1 = vor.u32 %v4061_v57, %v3268_v56  ;;  %v3397_v2 = vor.u32 %v4093_v60, %v3396_v58  ;;  %v3943_v56 = vld [vmem:[%s6221_s1 + $0xcc] sm:$0xf]  ;;  %v3209_v60 = vor.u32 %v4043_v45, %v3206_v46 }
  0xad   : > { %v3652_v63 = vld [vmem:[%s6221_s1 + $0x768] sm:$0xf]  ;;  %v3525_v3 = vor.u32 %v4125_v62, %v3524_v61  ;;  %v4057_v4 = vld [vmem:[%s6221_s1 + $0x454] sm:$0xf0]  ;;  %v2806_v57 = vld [vmem:[%s6221_s1 + $0xd8] sm:$0xf0] }
  0xae   : > { %2001 = vmatpush.bf16.msra.mxu0 %v2709_v7  ;;  %2014 = vmatpush.bf16.msra.mxu1 %v2837_v41  ;;  %v3252_v35 = vld [vmem:[%s6221_s1 + $0x448] sm:$0xf]  ;;  %v3653_v6 = vor.u32 %v4157_v0, %v3652_v63  ;;  %v4089_v7 = vld [vmem:[%s6221_s1 + $0x554] sm:$0xf0]  ;;  %v3975_v58 = vld [vmem:[%s6221_s1 + $0x1cc] sm:$0xf] }
  0xaf   : > { %2027 = vmatpush.bf16.msra.mxu2 %v2965_v9  ;;  %v3380_v5 = vld [vmem:[%s6221_s1 + $0x548] sm:$0xf]  ;;  %v4121_v39 = vld [vmem:[%s6221_s1 + $0x654] sm:$0xf0]  ;;  %v3253_v9 = vor.u32 %v4057_v4, %v3252_v35  ;;  %v2934_v61 = vld [vmem:[%s6221_s1 + $0x1d8] sm:$0xf0] }
  0xb0   : > { %2040 = vmatpush.bf16.msra.mxu3 %v3093_v12  ;;  %v3508_v8 = vld [vmem:[%s6221_s1 + $0x648] sm:$0xf]  ;;  %v4153_v41 = vld [vmem:[%s6221_s1 + $0x754] sm:$0xf0]  ;;  %v3381_v11 = vor.u32 %v4089_v7, %v3380_v5  ;;  %v4007_v62 = vld [vmem:[%s6221_s1 + $0x2cc] sm:$0xf]  ;;  %v2937_v4 = vor.u32 %v3975_v58, %v2934_v61 }
  0xb1   : > { %2002 = vmatmul.bf16.vlgmr.msra.gmra.mxu0 %v4651_v48  ;;  %2015 = vmatmul.bf16.vlgmr.msra.gmra.mxu1 %v4663_v52  ;;  %v3412_v48 = vld [vmem:[%s6221_s1 + $0x588] sm:$0xf]  ;;  %v4097_v52 = vld [vmem:[%s6221_s1 + $0x594] sm:$0xf0]  ;;  %v3509_v12 = vor.u32 %v4121_v39, %v3508_v8  ;;  %v3062_v63 = vld [vmem:[%s6221_s1 + $0x2d8] sm:$0xf0] }
  0xb2   : > { %2046 = vmatpush.bf16.msrb.mxu0 %v3333_v13  ;;  %2059 = vmatpush.bf16.msrb.mxu1 %v3461_v14  ;;  %v3413_v54 = vor.u32 %v4097_v52, %v3412_v48  ;;  %v3636_v40 = vld [vmem:[%s6221_s1 + $0x748] sm:$0xf]  ;;  %v4053_v13 = vld [vmem:[%s6221_s1 + $0x434] sm:$0xf0]  ;;  %v3065_v5 = vor.u32 %v4007_v62, %v3062_v63  ;;  %v3939_v7 = vld [vmem:[%s6221_s1 + $0xac] sm:$0xf] }
  0xb3   : > { %2072 = vmatpush.bf16.msrb.mxu2 %v3589_v15  ;;  %2041 = vmatmul.bf16.vlgmr.msra.gmra.mxu3 %v4653_v49  ;;  %v3685_v49 = vor.u32 %v4165_v37, %v3684_v36  ;;  %v3236_v10 = vld [vmem:[%s6221_s1 + $0x428] sm:$0xf]  ;;  %v4085_v15 = vld [vmem:[%s6221_s1 + $0x534] sm:$0xf0]  ;;  %v3637_v16 = vor.u32 %v4153_v41, %v3636_v40  ;;  %v3947_v36 = vld [vmem:[%s6221_s1 + $0xec] sm:$0xf] }
  0xb4   : > { %2085 = vmatpush.bf16.msrb.mxu3 %v3717_v19  ;;  %2028 = vmatmul.bf16.vlgmr.msra.gmra.mxu2 %v4649_v47  ;;  %v3557_v47 = vor.u32 %v4133_v34, %v3556_v33  ;;  %v3364_v14 = vld [vmem:[%s6221_s1 + $0x528] sm:$0xf]  ;;  %v4117_v18 = vld [vmem:[%s6221_s1 + $0x634] sm:$0xf0]  ;;  %v5456_v19 = vld [vmem:[%s6222_s2] sm:$0xf]  ;;  %v3237_v22 = vor.u32 %v4053_v13, %v3236_v10 }
  0xb5   : > { %v3492_v17 = vld [vmem:[%s6221_s1 + $0x628] sm:$0xf]  ;;  %v4149_v21 = vld [vmem:[%s6221_s1 + $0x734] sm:$0xf0]  ;;  %v1778_v30 = vperm.slane %v5456_v19, 0 }
  0xb6   : > { %2047 = vmatpush.bf16.msrb.mxu0 %v3317_v25  ;;  %2060 = vmatpush.bf16.msrb.mxu1 %v3445_v26  ;;  %v3620_v20 = vld [vmem:[%s6221_s1 + $0x728] sm:$0xf]  ;;  %v4049_v24 = vld [vmem:[%s6221_s1 + $0x414] sm:$0xf0]  ;;  %v3365_v26 = vor.u32 %v4085_v15, %v3364_v14  ;;  %v2822_v37 = vld [vmem:[%s6221_s1 + $0xf8] sm:$0xf0] }
  0xb7   : > { %2073 = vmatpush.bf16.msrb.mxu2 %v3573_v27  ;;  %v3220_v23 = vld [vmem:[%s6221_s1 + $0x408] sm:$0xf]  ;;  %v3493_v27 = vor.u32 %v4117_v18, %v3492_v17  ;;  %v4081_v28 = vld [vmem:[%s6221_s1 + $0x514] sm:$0xf0]  ;;  %v2790_v8 = vld [vmem:[%s6221_s1 + $0xb8] sm:$0xf0] }
  0xb8   : > { %2086 = vmatpush.bf16.msrb.mxu3 %v3701_v31  ;;  %v3348_v25 = vld [vmem:[%s6221_s1 + $0x508] sm:$0xf]  ;;  %v3621_v31 = vor.u32 %v4149_v21, %v3620_v20  ;;  %v4113_v32 = vld [vmem:[%s6221_s1 + $0x614] sm:$0xf0]  ;;  %v3971_v39 = vld [vmem:[%s6221_s1 + $0x1ac] sm:$0xf]  ;;  %v2793_v21 = vor.u32 %v3939_v7, %v2790_v8 }
  0xb9   : > { %v3476_v29 = vld [vmem:[%s6221_s1 + $0x608] sm:$0xf]  ;;  %v4145_v34 = vld [vmem:[%s6221_s1 + $0x714] sm:$0xf0]  ;;  %v2918_v10 = vld [vmem:[%s6221_s1 + $0x1b8] sm:$0xf0] }
  0xba   : > { %2048 = vmatpush.bf16.msrb.mxu0 %v3301_v38  ;;  %2061 = vmatpush.bf16.msrb.mxu1 %v3429_v42  ;;  %v3604_v33 = vld [vmem:[%s6221_s1 + $0x708] sm:$0xf]  ;;  %v3979_v38 = vld [vmem:[%s6221_s1 + $0x1ec] sm:$0xf]  ;;  %v3221_v42 = vor.u32 %v4049_v24, %v3220_v23  ;;  %v3477_v52 = vor.u32 %v4113_v32, %v3476_v29  ;;  %v5546_v41 = vld [vmem:[#allocation1 + $0x36] sm:$0xff] }
  0xbb   : > { %2074 = vmatpush.bf16.msrb.mxu2 %v3557_v47  ;;  %v2950_v47 = vld [vmem:[%s6221_s1 + $0x1f8] sm:$0xf0]  ;;  %v3605_v51 = vor.u32 %v4145_v34, %v3604_v33  ;;  %v5558_v14 = vld [vmem:[#allocation1 + $0x24] sm:$0xff]  ;;  %v5570_v20 = vld [vmem:[#allocation1 + $0x2d] sm:$0xff] }
  0xbc   : > { %2087 = vmatpush.bf16.msrb.mxu3 %v3685_v49  ;;  %v3349_v49 = vor.u32 %v4081_v28, %v3348_v25  ;;  %v5561_v15 = vld [vmem:[#allocation1 + $0x3f] sm:$0xff]  ;;  %v3935_v24 = vld [vmem:[%s6221_s1 + $0x8c] sm:$0xf] }
  0xbd   : > { %v3174_v17 = vld [vmem:[%s6221_s1 + $0x3b8] sm:$0xf0]  ;;  %v4031_v32 = vld [vmem:[%s6221_s1 + $0x38c] sm:$0xf] }
  0xbe   : > { %2049 = vmatpush.bf16.msrb.mxu0 %v3285_v53  ;;  %2062 = vmatpush.bf16.msrb.mxu1 %v3413_v54  ;;  %v2825_v53 = vor.u32 %v3947_v36, %v2822_v37  ;;  %v2953_v54 = vor.u32 %v3979_v38, %v2950_v47  ;;  %v2774_v25 = vld [vmem:[%s6221_s1 + $0x98] sm:$0xf0]  ;;  %v4027_v46 = vld [vmem:[%s6221_s1 + $0x36c] sm:$0xf] }
  0xbf   : > { %2075 = vmatpush.bf16.msrb.mxu2 %v3541_v55  ;;  %v3081_v55 = vor.u32 %v4011_v43, %v3078_v44  ;;  %v2902_v29 = vld [vmem:[%s6221_s1 + $0x198] sm:$0xf0]  ;;  %v2777_v34 = vor.u32 %v3935_v24, %v2774_v25  ;;  %v3963_v43 = vld [vmem:[%s6221_s1 + $0x16c] sm:$0xf] }
  0xc0   : > { %2088 = vmatpush.bf16.msrb.mxu3 %v3669_v59  ;;  %v3158_v33 = vld [vmem:[%s6221_s1 + $0x398] sm:$0xf0]  ;;  %v3991_v63 = vld [vmem:[%s6221_s1 + $0x24c] sm:$0xf] }
  0xc1   : > { %v2758_v47 = vld [vmem:[%s6221_s1 + $0x78] sm:$0xf0]  ;;  %v3923_v7 = vld [vmem:[%s6221_s1 + $0x2c] sm:$0xf] }
  0xc2   : > { %2050 = vmatpush.bf16.msrb.mxu0 %v3269_v1  ;;  %2063 = vmatpush.bf16.msrb.mxu1 %v3397_v2  ;;  %v4039_v1 = vld [vmem:[%s6221_s1 + $0x3cc] sm:$0xf]  ;;  %v3190_v2 = vld [vmem:[%s6221_s1 + $0x3d8] sm:$0xf0] }
  0xc3   : > { %2076 = vmatpush.bf16.msrb.mxu2 %v3525_v3  ;;  %v2809_v3 = vor.u32 %v3943_v56, %v2806_v57  ;;  %v3014_v45 = vld [vmem:[%s6221_s1 + $0x278] sm:$0xf0]  ;;  %v3927_v57 = vld [vmem:[%s6221_s1 + $0x4c] sm:$0xf] }
  0xc4   : > { %2089 = vmatpush.bf16.msrb.mxu3 %v3653_v6  ;;  %v1808_v59 = vpop.f32.mrf.mxu1  ;;  %v2742_v58 = vld [vmem:[%s6221_s1 + $0x58] sm:$0xf0] }
  0xc5   : > { %v1795_v48 = vpop.f32.mrf.mxu0  ;;  %v2870_v62 = vld [vmem:[%s6221_s1 + $0x158] sm:$0xf0] }
  0xc6   : > { %2051 = vmatpush.bf16.msrb.mxu0 %v3253_v9  ;;  %2064 = vmatpush.bf16.msrb.mxu1 %v3381_v11  ;;  %v1796_v50 = vadd.f32 %v1795_v48, %v1778_v30  ;;  %v3193_v9 = vor.u32 %v4039_v1, %v3190_v2  ;;  %v4003_v11 = vld [vmem:[%s6221_s1 + $0x2ac] sm:$0xf]  ;;  %v3161_v48 = vor.u32 %v4031_v32, %v3158_v33  ;;  %v3126_v2 = vld [vmem:[%s6221_s1 + $0x358] sm:$0xf0] }
  0xc7   : > { %2077 = vmatpush.bf16.msrb.mxu2 %v3509_v12  ;;  %v3046_v12 = vld [vmem:[%s6221_s1 + $0x2b8] sm:$0xf0]  ;;  %v3999_v30 = vld [vmem:[%s6221_s1 + $0x28c] sm:$0xf] }
  0xc8   : > { %2090 = vmatpush.bf16.msrb.mxu3 %v3637_v16  ;;  %v1809_v0 = vadd.f32 %v1808_v59, %v1796_v50  ;;  %v4035_v16 = vld [vmem:[%s6221_s1 + $0x3ac] sm:$0xf]  ;;  %v3049_v23 = vor.u32 %v4003_v11, %v3046_v12  ;;  %v3142_v50 = vld [vmem:[%s6221_s1 + $0x378] sm:$0xf0] }
  0xc9   : > { %v3177_v28 = vor.u32 %v4035_v16, %v3174_v17  ;;  %v3959_v59 = vld [vmem:[%s6221_s1 + $0x14c] sm:$0xf]  ;;  %v3145_v61 = vor.u32 %v4027_v46, %v3142_v50  ;;  %v2726_v8 = vld [vmem:[%s6221_s1 + $0x38] sm:$0xf0] }
  0xca   : > { %2052 = vmatpush.bf16.msrb.mxu0 %v3237_v22  ;;  %2065 = vmatpush.bf16.msrb.mxu1 %v3365_v26  ;;  %v1821_v35 = vpop.f32.mrf.mxu2  ;;  %v2921_v22 = vor.u32 %v3971_v39, %v2918_v10  ;;  %v3967_v26 = vld [vmem:[%s6221_s1 + $0x18c] sm:$0xf]  ;;  %v2854_v10 = vld [vmem:[%s6221_s1 + $0x138] sm:$0xf0] }
  0xcb   : > { %2078 = vmatpush.bf16.msrb.mxu2 %v3493_v27  ;;  %v1822_v6 = vadd.f32 %v1821_v35, %v1809_v0  ;;  %v2905_v37 = vor.u32 %v3967_v26, %v2902_v29  ;;  %v2998_v0 = vld [vmem:[%s6221_s1 + $0x258] sm:$0xf0]  ;;  %v4023_v1 = vld [vmem:[%s6221_s1 + $0x34c] sm:$0xf]  ;;  %v2745_v35 = vor.u32 %v3927_v57, %v2742_v58 }
  0xcc   : > { %2091 = vmatpush.bf16.msrb.mxu3 %v3621_v31  ;;  %v1834_v40 = vpop.f32.mrf.mxu3  ;;  %v1810_v27 = vpop.f32.mrf.mxu1  ;;  %v3030_v31 = vld [vmem:[%s6221_s1 + $0x298] sm:$0xf0]  ;;  %v3955_v39 = vld [vmem:[%s6221_s1 + $0x12c] sm:$0xf] }
  0xcd   : > { %v1797_v13 = vpop.f32.mrf.mxu0  ;;  %v1835_v18 = vadd.f32 %v1834_v40, %v1822_v6  ;;  %v3033_v38 = vor.u32 %v3999_v30, %v3030_v31  ;;  %v3129_v40 = vor.u32 %v4023_v1, %v3126_v2  ;;  %v3987_v11 = vld [vmem:[%s6221_s1 + $0x22c] sm:$0xf]  ;;  %v2982_v12 = vld [vmem:[%s6221_s1 + $0x238] sm:$0xf0]  ;;  %v2857_v25 = vor.u32 %v3955_v39, %v2854_v10 }
  0xce   : > { %2053 = vmatpush.bf16.msrb.mxu0 %v3221_v42  ;;  %2066 = vmatpush.bf16.msrb.mxu1 %v3349_v49  ;;  %v3931_v42 = vld [vmem:[%s6221_s1 + $0x6c] sm:$0xf]  ;;  %v2886_v49 = vld [vmem:[%s6221_s1 + $0x178] sm:$0xf0]  ;;  %v2985_v26 = vor.u32 %v3987_v11, %v2982_v12  ;;  %v4235_v11 = vld [vmem:[#allocation1] sm:$0xff] }
  0xcf   : > { %2079 = vmatpush.bf16.msrb.mxu2 %v3477_v52  ;;  %v3995_v52 = vld [vmem:[%s6221_s1 + $0x26c] sm:$0xf]  ;;  %v3110_v17 = vld [vmem:[%s6221_s1 + $0x338] sm:$0xf0] }
  0xd0   : > { %2092 = vmatpush.bf16.msrb.mxu3 %v3605_v51  ;;  %v2761_v51 = vor.u32 %v3931_v42, %v2758_v47  ;;  %v4019_v16 = vld [vmem:[%s6221_s1 + $0x32c] sm:$0xf]  ;;  %v2966_v32 = vld [vmem:[%s6221_s1 + $0x218] sm:$0xf0] }
  0xd1   : > { %2054 = vmatmul.bf16.vlgmr.msrb.gmra.mxu0 %v5558_v14  ;;  %2067 = vmatmul.bf16.vlgmr.msrb.gmra.mxu1 %v5570_v20  ;;  %v3951_v27 = vld [vmem:[%s6221_s1 + $0x10c] sm:$0xf]  ;;  %v3113_v31 = vor.u32 %v4019_v16, %v3110_v17  ;;  %v3462_v47 = vld [vmem:[%s6221_s1 + $0x5f8] sm:$0xf0] }
  0xd2   : > { %2098 = vmatpush.bf16.msra.mxu0 %v2825_v53  ;;  %2111 = vmatpush.bf16.msra.mxu1 %v2953_v54  ;;  %v1823_v36 = vpop.f32.mrf.mxu2  ;;  %v2889_v54 = vor.u32 %v3963_v43, %v2886_v49  ;;  %v3983_v29 = vld [vmem:[%s6221_s1 + $0x20c] sm:$0xf]  ;;  %v3318_v57 = vld [vmem:[%s6221_s1 + $0x4d8] sm:$0xf0] }
  0xd3   : > { %2124 = vmatpush.bf16.msra.mxu2 %v3081_v55  ;;  %2093 = vmatmul.bf16.vlgmr.msrb.gmra.mxu3 %v5561_v15  ;;  %v3017_v55 = vor.u32 %v3995_v52, %v3014_v45  ;;  %v4015_v33 = vld [vmem:[%s6221_s1 + $0x30c] sm:$0xf]  ;;  %v2969_v49 = vor.u32 %v3983_v29, %v2966_v32  ;;  %v3718_v45 = vld [vmem:[%s6221_s1 + $0x7f8] sm:$0xf0] }
  0xd4   : > { %2137 = vmatpush.bf16.msra.mxu3 %v3209_v60  ;;  %2080 = vmatmul.bf16.vlgmr.msrb.gmra.mxu2 %v5546_v41  ;;  %v1836_v44 = vpop.f32.mrf.mxu3  ;;  %v1860_v60 = vpop.f32.mrf.mxu1  ;;  %v4075_v36 = vld [vmem:[%s6221_s1 + $0x4ec] sm:$0xf]  ;;  %v3686_v10 = vld [vmem:[%s6221_s1 + $0x7b8] sm:$0xf0] }
  0xd5   : > { %v4139_v43 = vld [vmem:[%s6221_s1 + $0x6ec] sm:$0xf]  ;;  %v3590_v44 = vld [vmem:[%s6221_s1 + $0x6f8] sm:$0xf0] }
  0xd6   : > { %2099 = vmatpush.bf16.msra.mxu0 %v2809_v3  ;;  %2112 = vmatpush.bf16.msra.mxu1 %v2937_v4  ;;  %v1847_v53 = vpop.f32.mrf.mxu0  ;;  %v2873_v4 = vor.u32 %v3959_v59, %v2870_v62  ;;  %v4171_v52 = vld [vmem:[%s6221_s1 + $0x7ec] sm:$0xf]  ;;  %v3574_v62 = vld [vmem:[%s6221_s1 + $0x6d8] sm:$0xf0] }
  0xd7   : > { %2125 = vmatpush.bf16.msra.mxu2 %v3065_v5  ;;  %v1848_v56 = vadd.f32 %v1847_v53, %v1835_v18  ;;  %v3001_v5 = vor.u32 %v3991_v63, %v2998_v0  ;;  %v2729_v18 = vor.u32 %v3923_v7, %v2726_v8  ;;  %v4103_v58 = vld [vmem:[%s6221_s1 + $0x5cc] sm:$0xf]  ;;  %v3721_v59 = vor.u32 %v4171_v52, %v3718_v45  ;;  %v3702_v0 = vld [vmem:[%s6221_s1 + $0x7d8] sm:$0xf0]  ;;  %v4234_v7 = vld [vmem:[#allocation1 + $0x12] sm:$0xff] }
  0xd8   : > { %2138 = vmatpush.bf16.msra.mxu3 %v3193_v9  ;;  %v4167_v63 = vld [vmem:[%s6221_s1 + $0x7cc] sm:$0xf]  ;;  %v3430_v8 = vld [vmem:[%s6221_s1 + $0x5b8] sm:$0xf0] }
  0xd9   : > { %v1861_v3 = vadd.f32 %v1860_v60, %v1848_v56  ;;  %v4071_v56 = vld [vmem:[%s6221_s1 + $0x4cc] sm:$0xf]  ;;  %v3446_v60 = vld [vmem:[%s6221_s1 + $0x5d8] sm:$0xf0] }
  0xda   : > { %2100 = vmatpush.bf16.msra.mxu0 %v2793_v21  ;;  %2113 = vmatpush.bf16.msra.mxu1 %v2921_v22  ;;  %v3919_v22 = vld [vmem:[%s6221_s1 + $0xc] sm:$0xf]  ;;  %v3321_v1 = vor.u32 %v4071_v56, %v3318_v57  ;;  %v3449_v2 = vor.u32 %v4103_v58, %v3446_v60  ;;  %v4236_v12 = vld [vmem:[#allocation1 + $0x1b] sm:$0xff] }
  0xdb   : > { %2126 = vmatpush.bf16.msra.mxu2 %v3049_v23  ;;  %v1873_v6 = vpop.f32.mrf.mxu2  ;;  %v2710_v23 = vld [vmem:[%s6221_s1 + $0x18] sm:$0xf0]  ;;  %v4131_v39 = vld [vmem:[%s6221_s1 + $0x6ac] sm:$0xf] }
  0xdc   : > { %2139 = vmatpush.bf16.msra.mxu3 %v3177_v28  ;;  %v1874_v9 = vadd.f32 %v1873_v6, %v1861_v3  ;;  %v1886_v13 = vpop.f32.mrf.mxu3  ;;  %v2838_v28 = vld [vmem:[%s6221_s1 + $0x118] sm:$0xf0]  ;;  %v1862_v30 = vpop.f32.mrf.mxu1  ;;  %v2713_v42 = vor.u32 %v3919_v22, %v2710_v23  ;;  %v3705_v6 = vor.u32 %v4167_v63, %v3702_v0  ;;  %v4237_v16 = vld [vmem:[#allocation1 + $0x9] sm:$0xff] }
  0xdd   : > { %v4063_v22 = vld [vmem:[%s6221_s1 + $0x48c] sm:$0xf]  ;;  %v3286_v23 = vld [vmem:[%s6221_s1 + $0x498] sm:$0xf0] }
  0xde   : > { %2101 = vmatpush.bf16.msra.mxu0 %v2777_v34  ;;  %2114 = vmatpush.bf16.msra.mxu1 %v2905_v37  ;;  %v5669_v21 = vadd.f32 %v1886_v13, %v1874_v9  ;;  %v1849_v24 = vpop.f32.mrf.mxu0  ;;  %v3094_v34 = vld [vmem:[%s6221_s1 + $0x318] sm:$0xf0]  ;;  %v4163_v9 = vld [vmem:[%s6221_s1 + $0x7ac] sm:$0xf] }
  0xdf   : > { %2127 = vmatpush.bf16.msra.mxu2 %v3033_v38  ;;  %v3334_v37 = vld [vmem:[%s6221_s1 + $0x4f8] sm:$0xf0]  ;;  %v4107_v38 = vld [vmem:[%s6221_s1 + $0x5ec] sm:$0xf]  ;;  %v3097_v50 = vor.u32 %v4015_v33, %v3094_v34 }
  0xe0   : > { %2140 = vmatpush.bf16.msra.mxu3 %v3161_v48  ;;  %v2841_v48 = vor.u32 %v3951_v27, %v2838_v28  ;;  %v4095_v24 = vld [vmem:[%s6221_s1 + $0x58c] sm:$0xf]  ;;  %v3542_v28 = vld [vmem:[%s6221_s1 + $0x698] sm:$0xf0] }
  0xe1   : > { %v4127_v27 = vld [vmem:[%s6221_s1 + $0x68c] sm:$0xf]  ;;  %v3670_v30 = vld [vmem:[%s6221_s1 + $0x798] sm:$0xf0] }
  0xe2   : > { %2102 = vmatpush.bf16.msra.mxu0 %v2761_v51  ;;  %2115 = vmatpush.bf16.msra.mxu1 %v2889_v54  ;;  %v3337_v51 = vor.u32 %v4075_v36, %v3334_v37  ;;  %v3465_v54 = vor.u32 %v4107_v38, %v3462_v47  ;;  %v4159_v29 = vld [vmem:[%s6221_s1 + $0x78c] sm:$0xf]  ;;  %v3545_v34 = vor.u32 %v4127_v27, %v3542_v28  ;;  %v3270_v37 = vld [vmem:[%s6221_s1 + $0x478] sm:$0xf0] }
  0xe3   : > { %2128 = vmatpush.bf16.msra.mxu2 %v3017_v55  ;;  %v1875_v46 = vpop.f32.mrf.mxu2  ;;  %v3593_v55 = vor.u32 %v4139_v43, %v3590_v44  ;;  %v4059_v36 = vld [vmem:[%s6221_s1 + $0x46c] sm:$0xf]  ;;  %v3673_v47 = vor.u32 %v4159_v29, %v3670_v30  ;;  %v3398_v43 = vld [vmem:[%s6221_s1 + $0x578] sm:$0xf0]  ;;  %v3780_v30 = vld [vmem:[%s6223_s3 + $0x70] sm:$0xf] }
  0xe4   : > { %2141 = vmatpush.bf16.msra.mxu3 %v3145_v61  ;;  %v1888_v53 = vpop.f32.mrf.mxu3  ;;  %v4135_v61 = vld [vmem:[%s6221_s1 + $0x6cc] sm:$0xf]  ;;  %v3654_v52 = vld [vmem:[%s6221_s1 + $0x778] sm:$0xf0]  ;;  %v3273_v45 = vor.u32 %v4059_v36, %v3270_v37  ;;  %v3844_v36 = vld [vmem:[%s6223_s3 + $0xf0] sm:$0xf] }
  0xe5   : > { %v3577_v3 = vor.u32 %v4135_v61, %v3574_v62  ;;  %v4091_v38 = vld [vmem:[%s6221_s1 + $0x56c] sm:$0xf]  ;;  %v3254_v53 = vld [vmem:[%s6221_s1 + $0x458] sm:$0xf0]  ;;  %v4205_v37 = vld [vmem:[%s6223_s3 + $0xf4] sm:$0xf0] }
  0xe6   : > { %2103 = vmatpush.bf16.msra.mxu0 %v2745_v35  ;;  %2116 = vmatpush.bf16.msra.mxu1 %v2873_v4  ;;  %v4067_v35 = vld [vmem:[%s6221_s1 + $0x4ac] sm:$0xf]  ;;  %v3302_v4 = vld [vmem:[%s6221_s1 + $0x4b8] sm:$0xf0]  ;;  %v3401_v46 = vor.u32 %v4091_v38, %v3398_v43 }
  0xe7   : > { %2129 = vmatpush.bf16.msra.mxu2 %v3001_v5  ;;  %v4099_v5 = vld [vmem:[%s6221_s1 + $0x5ac] sm:$0xf]  ;;  %v3305_v13 = vor.u32 %v4067_v35, %v3302_v4  ;;  %v3382_v57 = vld [vmem:[%s6221_s1 + $0x558] sm:$0xf0] }
  0xe8   : > { %2142 = vmatpush.bf16.msra.mxu3 %v3129_v40  ;;  %v3558_v40 = vld [vmem:[%s6221_s1 + $0x6b8] sm:$0xf0]  ;;  %v3433_v17 = vor.u32 %v4099_v5, %v3430_v8  ;;  %v4123_v44 = vld [vmem:[%s6221_s1 + $0x66c] sm:$0xf] }
  0xe9   : > { %v4119_v58 = vld [vmem:[%s6221_s1 + $0x64c] sm:$0xf]  ;;  %v3638_v62 = vld [vmem:[%s6221_s1 + $0x758] sm:$0xf0] }
  0xea   : > { %2104 = vmatpush.bf16.msra.mxu0 %v2729_v18  ;;  %2117 = vmatpush.bf16.msra.mxu1 %v2857_v25  ;;  %v3561_v18 = vor.u32 %v4131_v39, %v3558_v40  ;;  %v3689_v25 = vor.u32 %v4163_v9, %v3686_v10  ;;  %v4151_v61 = vld [vmem:[%s6221_s1 + $0x74c] sm:$0xf]  ;;  %v3238_v35 = vld [vmem:[%s6221_s1 + $0x438] sm:$0xf0]  ;;  %v1779_v10 = vperm.slane %v5456_v19, 1 }
  0xeb   : > { %2130 = vmatpush.bf16.msra.mxu2 %v2985_v26  ;;  %v3414_v26 = vld [vmem:[%s6221_s1 + $0x598] sm:$0xf0]  ;;  %v4083_v4 = vld [vmem:[%s6221_s1 + $0x52c] sm:$0xf] }
  0xec   : > { %2143 = vmatpush.bf16.msra.mxu3 %v3113_v31  ;;  %v3289_v31 = vor.u32 %v4063_v22, %v3286_v23  ;;  %v3417_v33 = vor.u32 %v4095_v24, %v3414_v26  ;;  %v4115_v8 = vld [vmem:[%s6221_s1 + $0x62c] sm:$0xf]  ;;  %v3494_v39 = vld [vmem:[%s6221_s1 + $0x638] sm:$0xf0] }
  0xed   : > { %v4147_v40 = vld [vmem:[%s6221_s1 + $0x72c] sm:$0xf]  ;;  %v3622_v9 = vld [vmem:[%s6221_s1 + $0x738] sm:$0xf0] }
  0xee   : > { %2105 = vmatpush.bf16.msra.mxu0 %v2713_v42  ;;  %2118 = vmatpush.bf16.msra.mxu1 %v2841_v48  ;;  %v5791_v32 = vpop.f32.mrf.mxu0  ;;  %v5802_v42 = vpop.f32.mrf.mxu1  ;;  %v3526_v48 = vld [vmem:[%s6221_s1 + $0x678] sm:$0xf0]  ;;  %v3625_v24 = vor.u32 %v4147_v40, %v3622_v9  ;;  %v4143_v27 = vld [vmem:[%s6221_s1 + $0x70c] sm:$0xf]  ;;  %v3804_v40 = vld [vmem:[%s6223_s3 + $0xa0] sm:$0xf] }
  0xef   : > { %2131 = vmatpush.bf16.msra.mxu2 %v2969_v49  ;;  %v4155_v49 = vld [vmem:[%s6221_s1 + $0x76c] sm:$0xf]  ;;  %v3350_v22 = vld [vmem:[%s6221_s1 + $0x518] sm:$0xf0]  ;;  %v4195_v9 = vld [vmem:[%s6223_s3 + $0xa4] sm:$0xf0] }
  0xf0   : > { %2144 = vmatpush.bf16.msra.mxu3 %v3097_v50  ;;  %v3529_v50 = vor.u32 %v4123_v44, %v3526_v48  ;;  %v3657_v56 = vor.u32 %v4155_v49, %v3654_v52  ;;  %v3478_v26 = vld [vmem:[%s6221_s1 + $0x618] sm:$0xf0]  ;;  %v3845_v48 = vor.u32 %v4205_v37, %v3844_v36  ;;  %v3772_v49 = vld [vmem:[%s6223_s3 + $0x60] sm:$0xf]  ;;  %v4187_v52 = vld [vmem:[%s6223_s3 + $0x64] sm:$0xf0] }
  0xf1   : > { %2106 = vmatmul.bf16.vlgmr.msra.gmra.mxu0 %v4235_v11  ;;  %2119 = vmatmul.bf16.vlgmr.msra.gmra.mxu1 %v4237_v16  ;;  %v3497_v16 = vor.u32 %v4115_v8, %v3494_v39  ;;  %v3606_v29 = vld [vmem:[%s6221_s1 + $0x718] sm:$0xf0]  ;;  %v4179_v8 = vld [vmem:[%s6223_s3 + $0x24] sm:$0xf0]  ;;  %v3900_v37 = vld [vmem:[%s6223_s3 + $0x160] sm:$0xf] }
  0xf2   : > { %2150 = vmatpush.bf16.msrb.mxu0 %v3337_v51  ;;  %2163 = vmatpush.bf16.msrb.mxu1 %v3465_v54  ;;  %v4055_v51 = vld [vmem:[%s6221_s1 + $0x44c] sm:$0xf]  ;;  %v3609_v43 = vor.u32 %v4143_v27, %v3606_v29 }
  0xf3   : > { %2176 = vmatpush.bf16.msrb.mxu2 %v3593_v55  ;;  %2145 = vmatmul.bf16.vlgmr.msra.gmra.mxu3 %v4236_v12  ;;  %v4087_v54 = vld [vmem:[%s6221_s1 + $0x54c] sm:$0xf]  ;;  %v3257_v63 = vor.u32 %v4055_v51, %v3254_v53  ;;  %v3764_v53 = vld [vmem:[%s6223_s3 + $0x50] sm:$0xf] }
  0xf4   : > { %2189 = vmatpush.bf16.msrb.mxu3 %v3721_v59  ;;  %2132 = vmatmul.bf16.vlgmr.msra.gmra.mxu2 %v4234_v7  ;;  %v3510_v59 = vld [vmem:[%s6221_s1 + $0x658] sm:$0xf0]  ;;  %v4047_v12 = vld [vmem:[%s6221_s1 + $0x40c] sm:$0xf] }
  0xf5   : > { %v3366_v7 = vld [vmem:[%s6221_s1 + $0x538] sm:$0xf0] }
  0xf6   : > { %2151 = vmatpush.bf16.msrb.mxu0 %v3321_v1  ;;  %2164 = vmatpush.bf16.msrb.mxu1 %v3449_v2  ;;  %v5839_v60 = vpop.f32.mrf.mxu3  ;;  %v1901_v0 = vpop.f32.mrf.mxu0  ;;  %v3385_v1 = vor.u32 %v4087_v54, %v3382_v57  ;;  %v3513_v2 = vor.u32 %v4119_v58, %v3510_v59  ;;  %v4185_v54 = vld [vmem:[%s6223_s3 + $0x54] sm:$0xf0]  ;;  %v3820_v59 = vld [vmem:[%s6223_s3 + $0xc0] sm:$0xf] }
  0xf7   : > { %2177 = vmatpush.bf16.msrb.mxu2 %v3577_v3  ;;  %v5828_v55 = vpop.f32.mrf.mxu2  ;;  %v4051_v3 = vld [vmem:[%s6221_s1 + $0x42c] sm:$0xf]  ;;  %v1914_v5 = vpop.f32.mrf.mxu1  ;;  %v4181_v0 = vld [vmem:[%s6223_s3 + $0x34] sm:$0xf0] }
  0xf8   : > { %2190 = vmatpush.bf16.msrb.mxu3 %v3705_v6  ;;  %v3641_v6 = vor.u32 %v4151_v61, %v3638_v62  ;;  %v3241_v11 = vor.u32 %v4051_v3, %v3238_v35  ;;  %v3812_v3 = vld [vmem:[%s6223_s3 + $0xb0] sm:$0xf]  ;;  %v4197_v35 = vld [vmem:[%s6223_s3 + $0xb4] sm:$0xf0] }
  0xfa   : > { %2152 = vmatpush.bf16.msrb.mxu0 %v3305_v13  ;;  %2165 = vmatpush.bf16.msrb.mxu1 %v3433_v17  ;;  %v3369_v13 = vor.u32 %v4083_v4, %v3366_v7  ;;  %v3222_v17 = vld [vmem:[%s6221_s1 + $0x418] sm:$0xf0]  ;;  %v3740_v7 = vld [vmem:[%s6223_s3 + $0x20] sm:$0xf] }
  0xfb   : > { %2178 = vmatpush.bf16.msrb.mxu2 %v3561_v18  ;;  %v4079_v18 = vld [vmem:[%s6221_s1 + $0x50c] sm:$0xf] }
  0xfc   : > { %2191 = vmatpush.bf16.msrb.mxu3 %v3689_v25  ;;  %v4111_v25 = vld [vmem:[%s6221_s1 + $0x60c] sm:$0xf]  ;;  %v3353_v38 = vor.u32 %v4079_v18, %v3350_v22  ;;  %v4177_v18 = vld [vmem:[%s6223_s3 + $0x14] sm:$0xf0] }
  0xfe   : > { %2153 = vmatpush.bf16.msrb.mxu0 %v3289_v31  ;;  %2166 = vmatpush.bf16.msrb.mxu1 %v3417_v33  ;;  %v1940_v28 = vpop.f32.mrf.mxu3  ;;  %v4189_v31 = vld [vmem:[%s6223_s3 + $0x74] sm:$0xf0]  ;;  %v1900_v33 = vadd.f32 %v5791_v32, %v1779_v10 }
  0xff   : > { %2179 = vmatpush.bf16.msrb.mxu2 %v3545_v34  ;;  %v1927_v23 = vpop.f32.mrf.mxu2  ;;  %v3225_v34 = vor.u32 %v4047_v12, %v3222_v17  ;;  %v3781_v44 = vor.u32 %v4189_v31, %v3780_v30  ;;  %v3805_v17 = vor.u32 %v4195_v9, %v3804_v40  ;;  %v3724_v30 = vld [vmem:[%s6223_s3] sm:$0xf]  ;;  %v4175_v31 = vld [vmem:[%s6223_s3 + $0x4] sm:$0xf0]  ;;  %v3886_v40 = vld [vmem:[%s6223_s3 + $0x148] sm:$0xf0] }
 0x100   : > { %2192 = vmatpush.bf16.msrb.mxu3 %v3673_v47  ;;  %v3481_v47 = vor.u32 %v4111_v25, %v3478_v26  ;;  %v1913_v32 = vadd.f32 %v5802_v42, %v1900_v33  ;;  %v3773_v42 = vor.u32 %v4187_v52, %v3772_v49  ;;  %v3908_v23 = vld [vmem:[%s6223_s3 + $0x170] sm:$0xf]  ;;  %v4193_v26 = vld [vmem:[%s6223_s3 + $0x94] sm:$0xf0]  ;;  %v4220_v49 = vld [vmem:[%s6223_s3 + $0x174] sm:$0xf] }
 0x101   : > { %v3796_v25 = vld [vmem:[%s6223_s3 + $0x90] sm:$0xf]  ;;  %v3910_v52 = vld [vmem:[%s6223_s3 + $0x178] sm:$0xf0] }
 0x102   : > { %2154 = vmatpush.bf16.msrb.mxu0 %v3273_v45  ;;  %2167 = vmatpush.bf16.msrb.mxu1 %v3401_v46  ;;  %v3836_v45 = vld [vmem:[%s6223_s3 + $0xe0] sm:$0xf]  ;;  %v4203_v46 = vld [vmem:[%s6223_s3 + $0xe4] sm:$0xf0]  ;;  %v1926_v51 = vadd.f32 %v5828_v55, %v1913_v32  ;;  %v3765_v55 = vor.u32 %v4185_v54, %v3764_v53  ;;  %v3797_v33 = vor.u32 %v4193_v26, %v3796_v25  ;;  %v4202_v53 = vld [vmem:[%s6223_s3 + $0xe4] sm:$0xf] }
 0x103   : > { %2180 = vmatpush.bf16.msrb.mxu2 %v3529_v50  ;;  %v3837_v50 = vor.u32 %v4203_v46, %v3836_v45  ;;  %v3725_v46 = vor.u32 %v4175_v31, %v3724_v30  ;;  %v3838_v54 = vld [vmem:[%s6223_s3 + $0xe8] sm:$0xf0]  ;;  %v4194_v26 = vld [vmem:[%s6223_s3 + $0xa4] sm:$0xf] }
 0x104   : > { %2193 = vmatpush.bf16.msrb.mxu3 %v3657_v56  ;;  %v3828_v56 = vld [vmem:[%s6223_s3 + $0xd0] sm:$0xf]  ;;  %v1939_v57 = vadd.f32 %v5839_v60, %v1926_v51  ;;  %v3870_v31 = vld [vmem:[%s6223_s3 + $0x128] sm:$0xf0] }
 0x106   : > { %2155 = vmatpush.bf16.msrb.mxu0 %v3257_v63  ;;  %2168 = vmatpush.bf16.msrb.mxu1 %v3385_v1  ;;  %v3748_v63 = vld [vmem:[%s6223_s3 + $0x30] sm:$0xf] }
 0x107   : > { %2181 = vmatpush.bf16.msrb.mxu2 %v3513_v2  ;;  %v3749_v4 = vor.u32 %v4181_v0, %v3748_v63  ;;  %v4216_v0 = vld [vmem:[%s6223_s3 + $0x154] sm:$0xf] }
 0x108   : > { %2194 = vmatpush.bf16.msrb.mxu3 %v3641_v6  ;;  %v3813_v6 = vor.u32 %v4197_v35, %v3812_v3  ;;  %v3876_v3 = vld [vmem:[%s6223_s3 + $0x130] sm:$0xf]  ;;  %v4213_v35 = vld [vmem:[%s6223_s3 + $0x134] sm:$0xf0] }
 0x10a   : > { %2156 = vmatpush.bf16.msrb.mxu0 %v3241_v11  ;;  %2169 = vmatpush.bf16.msrb.mxu1 %v3369_v13  ;;  %v3741_v11 = vor.u32 %v4179_v8, %v3740_v7  ;;  %v3732_v13 = vld [vmem:[%s6223_s3 + $0x10] sm:$0xf]  ;;  %v3877_v8 = vor.u32 %v4213_v35, %v3876_v3 }
 0x10b   : > { %2182 = vmatpush.bf16.msrb.mxu2 %v3497_v16  ;;  %v3733_v29 = vor.u32 %v4177_v18, %v3732_v13  ;;  %v3878_v18 = vld [vmem:[%s6223_s3 + $0x138] sm:$0xf0] }
 0x10c   : > { %2195 = vmatpush.bf16.msrb.mxu3 %v3625_v24  ;;  %v4221_v24 = vld [vmem:[%s6223_s3 + $0x174] sm:$0xf0] }
 0x10d   : > { %v3909_v27 = vor.u32 %v4221_v24, %v3908_v23  ;;  %v4211_v23 = vld [vmem:[%s6223_s3 + $0x124] sm:$0xf0] }
 0x10e   : > { %2157 = vmatpush.bf16.msrb.mxu0 %v3225_v34  ;;  %2170 = vmatpush.bf16.msrb.mxu1 %v3353_v38  ;;  %v1951_v60 = vpop.f32.mrf.mxu0  ;;  %v1964_v2 = vpop.f32.mrf.mxu1  ;;  %v3788_v34 = vld [vmem:[%s6223_s3 + $0x80] sm:$0xf]  ;;  %v4219_v38 = vld [vmem:[%s6223_s3 + $0x164] sm:$0xf0] }
 0x10f   : > { %2183 = vmatpush.bf16.msrb.mxu2 %v3481_v47  ;;  %v1952_v1 = vadd.f32 %v1951_v60, %v1939_v57  ;;  %v4191_v47 = vld [vmem:[%s6223_s3 + $0x84] sm:$0xf0]  ;;  %v3901_v32 = vor.u32 %v4219_v38, %v3900_v37  ;;  %v4217_v57 = vld [vmem:[%s6223_s3 + $0x154] sm:$0xf0]  ;;  %v4200_v60 = vld [vmem:[%s6223_s3 + $0xd4] sm:$0xf] }
 0x110   : > { %2196 = vmatpush.bf16.msrb.mxu3 %v3609_v43  ;;  %v4204_v43 = vld [vmem:[%s6223_s3 + $0xf4] sm:$0xf] }
 0x111   : > { %2158 = vmatmul.bf16.vlgmr.msrb.gmra.mxu0 %v5558_v14  ;;  %2171 = vmatmul.bf16.vlgmr.msrb.gmra.mxu1 %v5570_v20  ;;  %v4201_v14 = vld [vmem:[%s6223_s3 + $0xd4] sm:$0xf0]  ;;  %v4183_v20 = vld [vmem:[%s6223_s3 + $0x44] sm:$0xf0]  ;;  %v1965_v5 = vadd.f32 %v1964_v2, %v1952_v1  ;;  %v3894_v2 = vld [vmem:[%s6223_s3 + $0x158] sm:$0xf0] }
 0x112   : > { %2521 = vmatpush.bf16.msra.mxu0 %v3781_v44  ;;  %2534 = vmatpush.bf16.msra.mxu1 %v3845_v48  ;;  %v3829_v58 = vor.u32 %v4201_v14, %v3828_v56  ;;  %v3846_v44 = vld [vmem:[%s6223_s3 + $0xf8] sm:$0xf0]  ;;  %v3913_v56 = vor.u32 %v4220_v49, %v3910_v52  ;;  %v4218_v14 = vld [vmem:[%s6223_s3 + $0x164] sm:$0xf]  ;;  %v3897_v7 = vor.u32 %v4216_v0, %v3894_v2 }
 0x113   : > { %2184 = vmatmul.bf16.vlgmr.msrb.gmra.mxu2 %v5546_v41  ;;  %2197 = vmatmul.bf16.vlgmr.msrb.gmra.mxu3 %v5561_v15  ;;  %v3756_v41 = vld [vmem:[%s6223_s3 + $0x40] sm:$0xf]  ;;  %v4199_v15 = vld [vmem:[%s6223_s3 + $0xc4] sm:$0xf0]  ;;  %v3849_v51 = vor.u32 %v4204_v43, %v3846_v44  ;;  %v3798_v43 = vld [vmem:[%s6223_s3 + $0x98] sm:$0xf0] }
 0x114   : > { %v3757_v61 = vor.u32 %v4183_v20, %v3756_v41  ;;  %v3821_v62 = vor.u32 %v4199_v15, %v3820_v59  ;;  %2547 = vmatpush.bf16.msra.mxu2 %v3909_v27  ;;  %v3884_v20 = vld [vmem:[%s6223_s3 + $0x140] sm:$0xf]  ;;  %v4215_v59 = vld [vmem:[%s6223_s3 + $0x144] sm:$0xf0]  ;;  %v3806_v27 = vld [vmem:[%s6223_s3 + $0xa8] sm:$0xf0] }
 0x115   : > { %v3885_v1 = vor.u32 %v4215_v59, %v3884_v20  ;;  %v3809_v38 = vor.u32 %v4194_v26, %v3806_v27  ;;  %v3862_v52 = vld [vmem:[%s6223_s3 + $0x118] sm:$0xf0] }
 0x116   : > { %2522 = vmatpush.bf16.msra.mxu0 %v3773_v42  ;;  %2535 = vmatpush.bf16.msra.mxu1 %v3837_v50  ;;  %v1990_v10 = vpop.f32.mrf.mxu3  ;;  %v1953_v16 = vpop.f32.mrf.mxu0  ;;  %v2202_v42 = vmax.f32 %v5669_v21, 0.0  ;;  %v3789_v50 = vor.u32 %v4191_v47, %v3788_v34  ;;  %v3902_v21 = vld [vmem:[%s6223_s3 + $0x168] sm:$0xf0]  ;;  %v4209_v34 = vld [vmem:[%s6223_s3 + $0x114] sm:$0xf0] }
 0x117   : > { %v1977_v39 = vpop.f32.mrf.mxu2  ;;  %v1966_v22 = vpop.f32.mrf.mxu1  ;;  %v3905_v63 = vor.u32 %v4218_v14, %v3902_v21  ;;  %v4212_v16 = vld [vmem:[%s6223_s3 + $0x134] sm:$0xf]  ;;  %v4206_v21 = vld [vmem:[%s6223_s3 + $0x104] sm:$0xf]  ;;  %v3766_v26 = vld [vmem:[%s6223_s3 + $0x58] sm:$0xf0] }
 0x118   : > { %v1978_v12 = vadd.f32 %v1977_v39, %v1965_v5  ;;  %2548 = vmatpush.bf16.msra.mxu2 %v3901_v32  ;;  %v6051_v15 = vpack.c.bf16 %v2202_v42, %v2202_v42  ;;  %v4198_v5 = vld [vmem:[%s6223_s3 + $0xc4] sm:$0xf]  ;;  %v3868_v22 = vld [vmem:[%s6223_s3 + $0x120] sm:$0xf]  ;;  %v4192_v47 = vld [vmem:[%s6223_s3 + $0x94] sm:$0xf] }
 0x119   : > { %v4214_v39 = vld [vmem:[%s6223_s3 + $0x144] sm:$0xf]  ;;  %v3869_v24 = vor.u32 %v4211_v23, %v3868_v22  ;;  %v4208_v32 = vld [vmem:[%s6223_s3 + $0x114] sm:$0xf] }
 0x11a   : > { %2523 = vmatpush.bf16.msra.mxu0 %v3765_v55  ;;  %2536 = vmatpush.bf16.msra.mxu1 %v3829_v58  ;;  %v1991_v28 = vadd.f32 %v1990_v10, %v1978_v12  ;;  %v3892_v55 = vld [vmem:[%s6223_s3 + $0x150] sm:$0xf]  ;;  %v4196_v10 = vld [vmem:[%s6223_s3 + $0xb4] sm:$0xf]  ;;  %v3889_v13 = vor.u32 %v4214_v39, %v3886_v40  ;;  %v2258_v39 = vld [vmem:[%s6223_s3 + $0x180] sm:$0xff] }
 0x11b   : > { %v3893_v41 = vor.u32 %v4217_v57, %v3892_v55 }
 0x11c   : > { %v2203_v45 = vmax.f32 %v1991_v28, 0.0  ;;  %v3881_v28 = vor.u32 %v4212_v16, %v3878_v18  ;;  %v3774_v18 = vld [vmem:[%s6223_s3 + $0x68] sm:$0xf0] }
 0x11d   : > { %2549 = vmatpush.bf16.msra.mxu2 %v3893_v41 }
 0x11e   : > { %2524 = vmatpush.bf16.msra.mxu0 %v3757_v61  ;;  %2537 = vmatpush.bf16.msra.mxu1 %v3821_v62  ;;  %v1992_v48 = vpop.f32.mrf.mxu3  ;;  %v6043_v58 = vpack.c.bf16 %v2203_v45, %v2203_v45  ;;  %v3841_v61 = vor.u32 %v4202_v53, %v3838_v54  ;;  %v3830_v62 = vld [vmem:[%s6223_s3 + $0xd8] sm:$0xf0]  ;;  %v3852_v45 = vld [vmem:[%s6223_s3 + $0x100] sm:$0xf]  ;;  %v4190_v53 = vld [vmem:[%s6223_s3 + $0x84] sm:$0xf] }
 0x11f   : > { %v1979_v36 = vpop.f32.mrf.mxu2  ;;  %v3790_v54 = vld [vmem:[%s6223_s3 + $0x88] sm:$0xf0] }
 0x120   : > { %v3793_v41 = vor.u32 %v4190_v53, %v3790_v54  ;;  %v3734_v53 = vld [vmem:[%s6223_s3 + $0x18] sm:$0xf0] }
 0x121   : > { %2550 = vmatpush.bf16.msra.mxu2 %v3885_v1 }
 0x122   : > { %2525 = vmatpush.bf16.msra.mxu0 %v3749_v4  ;;  %2538 = vmatpush.bf16.msra.mxu1 %v3813_v6  ;;  %v3833_v4 = vor.u32 %v4200_v60, %v3830_v62  ;;  %v3822_v6 = vld [vmem:[%s6223_s3 + $0xc8] sm:$0xf0] }
 0x123   : > { %v3825_v9 = vor.u32 %v4198_v5, %v3822_v6 }
 0x125   : > { %2551 = vmatpush.bf16.msra.mxu2 %v3877_v8 }
 0x126   : > { %2526 = vmatpush.bf16.msra.mxu0 %v3741_v11  ;;  %2539 = vmatpush.bf16.msra.mxu1 %v3805_v17  ;;  %v3814_v11 = vld [vmem:[%s6223_s3 + $0xb8] sm:$0xf0] }
 0x127   : > { %v3817_v25 = vor.u32 %v4196_v10, %v3814_v11 }
 0x129   : > { %2552 = vmatpush.bf16.msra.mxu2 %v3869_v24 }
 0x12a   : > { %2527 = vmatpush.bf16.msra.mxu0 %v3733_v29  ;;  %2540 = vmatpush.bf16.msra.mxu1 %v3797_v33  ;;  %v4210_v29 = vld [vmem:[%s6223_s3 + $0x124] sm:$0xf]  ;;  %v3860_v33 = vld [vmem:[%s6223_s3 + $0x110] sm:$0xf] }
 0x12b   : > { %v3861_v37 = vor.u32 %v4209_v34, %v3860_v33  ;;  %v3873_v48 = vor.u32 %v4210_v29, %v3870_v31  ;;  %v2406_v29 = vunpack.c.h.b16 %v2258_v39  ;;  %v4182_v31 = vld [vmem:[%s6223_s3 + $0x44] sm:$0xf]  ;;  %v3758_v33 = vld [vmem:[%s6223_s3 + $0x48] sm:$0xf0] }
 0x12d   : > { %2553 = vmatpush.bf16.msra.mxu2 %v3861_v37  ;;  %v2456_v34 = vpack.c.b16 %v2406_v29, %v2406_v29  ;;  %v3761_v37 = vor.u32 %v4182_v31, %v3758_v33 }
 0x12e   : > { %2528 = vmatpush.bf16.msra.mxu0 %v3725_v46  ;;  %2541 = vmatpush.bf16.msra.mxu1 %v3789_v50  ;;  %v2003_v12 = vpop.f32.mrf.mxu0  ;;  %v2016_v17 = vpop.f32.mrf.mxu1  ;;  %v4207_v46 = vld [vmem:[%s6223_s3 + $0x104] sm:$0xf0]  ;;  %v3801_v50 = vor.u32 %v4192_v47, %v3798_v43  ;;  %v4180_v43 = vld [vmem:[%s6223_s3 + $0x34] sm:$0xf] }
 0x12f   : > { %v3853_v42 = vor.u32 %v4207_v46, %v3852_v45  ;;  %v2519_v47 = vsel %vm2514_vm0, %v2456_v34, 0  ;;  %v3742_v45 = vld [vmem:[%s6223_s3 + $0x28] sm:$0xf0] }
 0x131   : > { %2529 = vmatmul.bf16.vlgmr.msra.gmra.mxu0 %v6051_v15  ;;  %2542 = vmatmul.bf16.vlgmr.msra.gmra.mxu1 %v6043_v58 }
 0x132   : > { %2586 = vmatpush.bf16.msrb.mxu0 %v3849_v51  ;;  %2599 = vmatpush.bf16.msrb.mxu1 %v3913_v56  ;;  %v1780_v51 = vperm.slane %v5456_v19, 2  ;;  %v3865_v56 = vor.u32 %v4208_v32, %v3862_v52  ;;  %v3854_v19 = vld [vmem:[%s6223_s3 + $0x108] sm:$0xf0]  ;;  %v4178_v52 = vld [vmem:[%s6223_s3 + $0x24] sm:$0xf] }
 0x133   : > { %2554 = vmatpush.bf16.msra.mxu2 %v3853_v42  ;;  %v3857_v20 = vor.u32 %v4206_v21, %v3854_v19  ;;  %v3726_v21 = vld [vmem:[%s6223_s3 + $0x8] sm:$0xf0] }
 0x134   : > { %v2004_v57 = vadd.f32 %v2003_v12, %v1780_v51  ;;  %v4188_v12 = vld [vmem:[%s6223_s3 + $0x74] sm:$0xf] }
 0x135   : > { %v4176_v51 = vld [vmem:[%s6223_s3 + $0x14] sm:$0xf] }
 0x136   : > { %2587 = vmatpush.bf16.msrb.mxu0 %v3841_v61  ;;  %2600 = vmatpush.bf16.msrb.mxu1 %v3905_v63  ;;  %v2042_v36 = vpop.f32.mrf.mxu3  ;;  %v2005_v44 = vpop.f32.mrf.mxu0  ;;  %v2017_v59 = vadd.f32 %v2016_v17, %v2004_v57  ;;  %v4186_v17 = vld [vmem:[%s6223_s3 + $0x64] sm:$0xf] }
 0x137   : > { %v2029_v30 = vpop.f32.mrf.mxu2  ;;  %v2018_v49 = vpop.f32.mrf.mxu1  ;;  %v3777_v23 = vor.u32 %v4186_v17, %v3774_v18  ;;  %2619 = vmatpush.bf16.msrb.mxu2 %v2519_v47  ;;  %v3750_v44 = vld [vmem:[%s6223_s3 + $0x38] sm:$0xf0] }
 0x138   : > { %v2030_v61 = vadd.f32 %v2029_v30, %v2017_v59  ;;  %v3753_v49 = vor.u32 %v4180_v43, %v3750_v44 }
 0x13a   : > { %2588 = vmatpush.bf16.msrb.mxu0 %v3833_v4  ;;  %2601 = vmatpush.bf16.msrb.mxu1 %v3897_v7  ;;  %v2043_v60 = vadd.f32 %v2042_v36, %v2030_v61 }
 0x13e   : > { %2589 = vmatpush.bf16.msrb.mxu0 %v3825_v9  ;;  %2602 = vmatpush.bf16.msrb.mxu1 %v3889_v13  ;;  %v2044_v55 = vpop.f32.mrf.mxu3  ;;  %v3782_v13 = vld [vmem:[%s6223_s3 + $0x78] sm:$0xf0] }
 0x13f   : > { %v2031_v14 = vpop.f32.mrf.mxu2  ;;  %v3785_v16 = vor.u32 %v4188_v12, %v3782_v13 }
 0x140   : > { %v4174_v14 = vld [vmem:[%s6223_s3 + $0x4] sm:$0xf] }
 0x141   : > { %v3729_v55 = vor.u32 %v4174_v14, %v3726_v21 }
 0x142   : > { %2590 = vmatpush.bf16.msrb.mxu0 %v3817_v25  ;;  %2603 = vmatpush.bf16.msrb.mxu1 %v3881_v28  ;;  %v4184_v25 = vld [vmem:[%s6223_s3 + $0x54] sm:$0xf] }
 0x143   : > { %v3769_v27 = vor.u32 %v4184_v25, %v3766_v26 }
 0x146   : > { %2591 = vmatpush.bf16.msrb.mxu0 %v3809_v38  ;;  %2604 = vmatpush.bf16.msrb.mxu1 %v3873_v48  ;;  %v4238_v48 = vld [vmem:[%s6222_s2] sm:$0xf] }
 0x147   : > { %v1781_v32 = vperm.slane %v4238_v48, 3 }
 0x14a   : > { %2592 = vmatpush.bf16.msrb.mxu0 %v3801_v50  ;;  %2605 = vmatpush.bf16.msrb.mxu1 %v3865_v56  ;;  %v3745_v50 = vor.u32 %v4178_v52, %v3742_v45  ;;  %v3737_v56 = vor.u32 %v4176_v51, %v3734_v53 }
 0x14e   : > { %2593 = vmatpush.bf16.msrb.mxu0 %v3793_v41  ;;  %2606 = vmatpush.bf16.msrb.mxu1 %v3857_v20  ;;  %v2055_v62 = vpop.f32.mrf.mxu0  ;;  %v2068_v0 = vpop.f32.mrf.mxu1 }
 0x14f   : > { %v2056_v63 = vadd.f32 %v2055_v62, %v2043_v60 }
 0x151   : > { %2594 = vmatmul.bf16.vlgmr.msrb.gmra.mxu0 %v6043_v58  ;;  %v2069_v1 = vadd.f32 %v2068_v0, %v2056_v63  ;;  %v2405_v58 = vunpack.c.l.b16 %v2258_v39 }
 0x153   : > { %v2455_v10 = vpack.c.b16 %v2405_v58, %v2405_v58 }
 0x155   : > { %v2516_v11 = vsel %vm2514_vm0, %v2455_v10, 0 }
 0x156   : > { %v2094_v35 = vpop.f32.mrf.mxu3  ;;  %v2057_v5 = vpop.f32.mrf.mxu0  ;;  %2567 = vmatpush.bf16.msra.mxu3 %v2516_v11 }
 0x157   : > { %v2081_v2 = vpop.f32.mrf.mxu2  ;;  %v2070_v6 = vpop.f32.mrf.mxu1 }
 0x158   : > { %v2082_v3 = vadd.f32 %v2081_v2, %v2069_v1 }
 0x15a   : > { %v2095_v4 = vadd.f32 %v2094_v35, %v2082_v3  ;;  %2573 = vmatpush.bf16.msrb.mxu3 %v3785_v16 }
 0x15c   : > { %v2204_v7 = vmax.f32 %v2095_v4, 0.0 }
 0x15e   : > { %v2208_v8 = vpack.c.bf16 %v2204_v7, %v2204_v7  ;;  %v2096_v9 = vpop.f32.mrf.mxu3  ;;  %2574 = vmatpush.bf16.msrb.mxu3 %v3777_v23  ;;  %v2259_v7 = vld [vmem:[%s6224_s4] sm:$0x3] }
 0x15f   : > { %v2083_v40 = vpop.f32.mrf.mxu2 }
 0x160   : > { %2555 = vmatmul.bf16.vlgmr.msra.gmra.mxu2 %v2208_v8  ;;  %2607 = vmatmul.bf16.vlgmr.msrb.gmra.mxu1 %v2208_v8  ;;  %v2506_v8 = vperm.slane %v2259_v7, 0 }
 0x162   : > { %2575 = vmatpush.bf16.msrb.mxu3 %v3769_v27 }
 0x166   : > { %2576 = vmatpush.bf16.msrb.mxu3 %v3761_v37 }
 0x16a   : > { %2577 = vmatpush.bf16.msrb.mxu3 %v3753_v49 }
 0x16e   : > { %v2107_v22 = vpop.f32.mrf.mxu0  ;;  %v2120_v24 = vpop.f32.mrf.mxu1  ;;  %2578 = vmatpush.bf16.msrb.mxu3 %v3745_v50 }
 0x16f   : > { %v2108_v54 = vadd.f32 %v2107_v22, %v1781_v32 }
 0x171   : > { %v2121_v19 = vadd.f32 %v2120_v24, %v2108_v54 }
 0x172   : > { %2579 = vmatpush.bf16.msrb.mxu3 %v3737_v56 }
 0x176   : > { %v2146_v30 = vpop.f32.mrf.mxu3  ;;  %v2109_v36 = vpop.f32.mrf.mxu0  ;;  %2580 = vmatpush.bf16.msrb.mxu3 %v3729_v55 }
 0x177   : > { %v2133_v28 = vpop.f32.mrf.mxu2  ;;  %v2122_v38 = vpop.f32.mrf.mxu1  ;;  %v2633_v36 = vlaneseq }
 0x178   : > { %v2134_v57 = vadd.f32 %v2133_v28, %v2121_v19  ;;  %v2507_v28 = vperm.slane %v2259_v7, 1 }
 0x179   : > { %vm2635_vm3 = vcmp.lt.s32.totalorder %v2633_v36, 144 }
 0x17a   : > { %v2147_v41 = vadd.f32 %v2146_v30, %v2134_v57 }
 0x17e   : > { %v2148_v42 = vpop.f32.mrf.mxu3 }
 0x17f   : > { %v2135_v46 = vpop.f32.mrf.mxu2 }
 0x18e   : > { %v2159_v20 = vpop.f32.mrf.mxu0  ;;  %v2172_v59 = vpop.f32.mrf.mxu1 }
 0x18f   : > { %v2160_v61 = vadd.f32 %v2159_v20, %v2147_v41 }
 0x191   : > { %v2173_v60 = vadd.f32 %v2172_v59, %v2160_v61 }
 0x196   : > { %v2185_v62 = vpop.f32.mrf.mxu2  ;;  %v2198_v0 = vpop.f32.mrf.mxu3 }
 0x197   : > { %v2186_v63 = vadd.f32 %v2185_v62, %v2173_v60  ;;  %v2161_v1 = vpop.f32.mrf.mxu0  ;;  %v2174_v2 = vpop.f32.mrf.mxu1 }
 0x199   : > { %v2199_v3 = vadd.f32 %v2198_v0, %v2186_v63 }
 0x19b   : > { %v2205_v35 = vmax.f32 %v2199_v3, 0.0 }
 0x19d   : > { %v2209_v4 = vpack.c.bf16 %v2205_v35, %v2205_v35 }
 0x19e   : > { %v2187_v5 = vpop.f32.mrf.mxu2  ;;  %v2200_v6 = vpop.f32.mrf.mxu3 }
 0x19f   : > { %3914 = vmatmul.msk.bf16.vlgmr.msra.gmra.mxu3 %vm2510_vm1, %v2209_v4  ;;  %3915 = vmatmul.msk.bf16.vlgmr.msrb.gmra.mxu2 %vm2510_vm1, %v2209_v4 }
 0x1ae   : > { %v2530_v39 = vpop.f32.mrf.mxu0  ;;  %v2543_v58 = vpop.f32.mrf.mxu1 }
 0x1af   : > { %v2531_v40 = vadd.f32 %v2530_v39, %v2506_v8  ;;  %2581 = vmatmul.bf16.vlgmr.msrb.gmra.mxu3 %v6051_v15 }
 0x1b1   : > { %v2544_v9 = vadd.f32 %v2543_v58, %v2531_v40 }
 0x1b6   : > { %v2532_v10 = vpop.f32.mrf.mxu0  ;;  %v2545_v11 = vpop.f32.mrf.mxu1 }
 0x1ce   : > { %v2595_v12 = vpop.f32.mrf.mxu0 }
 0x1d6   : > { %v2597_v13 = vpop.f32.mrf.mxu0 }
 0x1dd   : > { %v2608_v16 = vpop.f32.mrf.mxu1 }
 0x1e3   : > { %v2556_v17 = vpop.f32.mrf.mxu2 }
 0x1e4   : > { %v2557_v18 = vadd.f32 %v2556_v17, %v2544_v9 }
 0x1e5   : > { %v2610_v22 = vpop.f32.mrf.mxu1 }
 0x1eb   : > { %v2558_v23 = vpop.f32.mrf.mxu2 }
 0x222   : > { %v2569_v24 = vpop.f32.mrf.mxu3  ;;  %v2621_v25 = vpop.f32.mrf.mxu2 }
 0x223   : > { %v2570_v33 = vadd.f32 %v2569_v24, %v2557_v18 }
 0x225   : > { %v2625_v47 = vmax.f32 %v2570_v33, 0.0 }
 0x22a   : > { %v2571_v26 = vpop.f32.mrf.mxu3  ;;  %v2623_v27 = vpop.f32.mrf.mxu2 }
 0x232   : > { %v2582_v29 = vpop.f32.mrf.mxu3 }
 0x233   : > { %v2583_v30 = vadd.f32 %v2582_v29, %v2507_v28 }
 0x235   : > { %v2596_v31 = vadd.f32 %v2595_v12, %v2583_v30 }
 0x237   : > { %v2609_v15 = vadd.f32 %v2608_v16, %v2596_v31 }
 0x239   : > { %v2622_v34 = vadd.f32 %v2621_v25, %v2609_v15 }
 0x23a   : > { %v2584_v37 = vpop.f32.mrf.mxu3 }
 0x23b   : > { %v2626_v38 = vmax.f32 %v2622_v34, 0.0 }
 0x23d   : > { %v2629_v43 = vrot.slane %v2626_v38, 7 }
 0x23f   : > { %v2631_v44 = vsel %vm2630_vm2, %v2625_v47, %v2629_v43 }
 0x240   : > { %2637 = vst.msk [vmem:[%s219_s7] sm:$0x3] %vm2635_vm3, %v2631_v44 }
 0x241 PF: > { %s15_s18 = sadd.s32 1, %s4245_s18  }
 0x242   : > { %p12_p4 = scmp.ge.s32.totalorder %s15_s18, 4  }
 0x244   :  { %14 = sbr.rel (!%p12_p4) target bundleno = 1 (0x1), region = 70 }

</bundles_post_ra>
